<compile_context>
chip_gen: v5e
topology: v5e:2x2
jax: 0.10.0
libtpu: 0.0.40
codegen_flags: <defaults>
</compile_context>

<pallas_src>
import functools

import jax
import jax.numpy as jnp
from jax.experimental import pallas as pl
from jax.experimental.pallas import tpu as pltpu

# Keep the pure-JAX reference matmuls at full f32 accuracy so the f32 kernel
# path can be checked at tight tolerance.
jax.config.update("jax_default_matmul_precision", "highest")


# --------------------------- param fusion (plain JAX) ----------------------- #
def _block_diag(blocks):
    """(N, r, c) -> (N*r, N*c) block-diagonal matrix."""
    n, r, c = blocks.shape
    eye = jnp.eye(n, dtype=blocks.dtype)
    out = eye[:, None, :, None] * blocks[:, :, None, :]   # (n, r, n, c)
    return out.reshape(n * r, n * c)


def pack_ensemble_prior_params(params, prior_params, prior_scale,
                               final_activation=False,
                               param_dtype=jnp.bfloat16):
    """Fuse trainable + prior EnsembleLinear params into two lane-dense slabs.

    Returns ((slab, w3_mat), meta) where
      slab   : (d_in_pad + 2E*H + 4, 2E*H)  rows = [W1_cat | W2_blockdiag |
               b1 | b2 | b3_row_a | b3_row_b]
      w3_mat : (2E*H, E*O)   if final_activation=False  (combine+scale folded)
               (4E*H, E*O)   if final_activation=True   (net/prior stacked on K)
    Member ordering along the fused hidden axis is
    [net member 0..E-1, prior member 0..E-1].
    """
    # prior_values.detach() in the PyTorch module: stop gradients into the
    # prior parameters (forward pass is unchanged).
    prior_params = jax.tree_util.tree_map(jax.lax.stop_gradient, prior_params)

    w1, b1, w2, b2, w3, b3 = [p.astype(jnp.float32) for p in params]
    pw1, pb1, pw2, pb2, pw3, pb3 = [p.astype(jnp.float32) for p in prior_params]

    E, d_in, H = w1.shape
    O = w3.shape[-1]
    width = 2 * E * H
    eo = E * O
    d_in_pad = ((d_in + 7) // 8) * 8          # sublane-align the W2 section
    ps = float(prior_scale)

    # Layer 1 / 2 (fused over the 2E members).
    w1_cat = jnp.concatenate([w1, pw1], 0).transpose(1, 0, 2).reshape(d_in, width)
    w2_blk = _block_diag(jnp.concatenate([w2, pw2], 0))          # (width, width)
    b1_row = jnp.concatenate([b1, pb1], 0).reshape(width)
    b2_row = jnp.concatenate([b2, pb2], 0).reshape(width)

    # Layer 3.
    w3n = _block_diag(w3)                                        # (E*H, E*O)
    w3p = _block_diag(pw3)                                       # (E*H, E*O)
    b3n = b3.reshape(eo)
    b3p = pb3.reshape(eo)
    zeros_half = jnp.zeros((E * H, eo), jnp.float32)
    if final_activation:
        # ReLU precedes the combine -> keep net & prior separate; stack along K
        # (zero-padded) so the kernel never lane-slices the hidden activations.
        w3_mat = jnp.concatenate(
            [jnp.concatenate([w3n, zeros_half], axis=0),    # net half of h only
             jnp.concatenate([zeros_half, w3p], axis=0)],   # prior half only
            axis=0)                                          # (2*width, eo)
        b3_row_a, b3_row_b = b3n, b3p
    else:
        # Fold the prior combine and prior_scale into layer 3 (exactly linear).
        w3_mat = jnp.concatenate([w3n, ps * w3p], axis=0)        # (width, eo)
        b3_row_a = b3n + ps * b3p
        b3_row_b = jnp.zeros((eo,), jnp.float32)

    def pad_row(v):
        return jnp.zeros((width,), jnp.float32).at[: v.shape[0]].set(v)

    bias_rows = jnp.stack(
        [b1_row, b2_row, pad_row(b3_row_a), pad_row(b3_row_b)], axis=0)

    w1_padded = jnp.zeros((d_in_pad, width), jnp.float32).at[:d_in].set(w1_cat)
    slab = jnp.concatenate([w1_padded, w2_blk, bias_rows], axis=0)

    slab = slab.astype(param_dtype)
    w3_mat = w3_mat.astype(param_dtype)

    meta = dict(E=E, H=H, O=O, d_in=d_in, d_in_pad=d_in_pad, width=width,
                eo=eo, prior_scale=ps, final_activation=bool(final_activation),
                param_dtype=param_dtype)
    return (slab, w3_mat), meta


# ------------------------------ Pallas kernel ------------------------------- #
def _ensemble_prior_kernel(x_ref, slab_ref, w3_ref, out_ref, *,
                           d_in, d_in_pad, width, eo, prior_scale,
                           final_activation, dot_dtype):
    """Single invocation: all 2E MLPs as 3 fused matmuls.

    x_ref   : (B, d_in)                          param_dtype
    slab_ref: (d_in_pad + width + 4, width)      param_dtype
    w3_ref  : (width, eo) or (2*width, eo)       param_dtype
    out_ref : (B, eo)                            f32
    """
    f32 = jnp.float32
    x = x_ref[...]

    w1 = slab_ref[0:d_in, :]                                  # (d_in, width)
    w2 = slab_ref[d_in_pad:d_in_pad + width, :]               # (width, width)
    brow = d_in_pad + width
    b1 = slab_ref[brow + 0:brow + 1, :].astype(f32)           # (1, width)
    b2 = slab_ref[brow + 1:brow + 2, :].astype(f32)           # (1, width)

    # Layer 1 + 2 (elementwise work stays f32; only dot inputs use dot_dtype).
    h = jnp.dot(x, w1, preferred_element_type=f32) + b1
    h = jnp.maximum(h, 0.0)
    h = jnp.dot(h.astype(dot_dtype), w2, preferred_element_type=f32) + b2
    h = jnp.maximum(h, 0.0)
    hb = h.astype(dot_dtype)

    if not final_activation:
        # prior_scale + combine are already folded into w3/b3 -> direct output.
        b3 = slab_ref[brow + 2:brow + 3, 0:eo].astype(f32)     # (1, eo)
        out = jnp.dot(hb, w3_ref[...], preferred_element_type=f32) + b3
    else:
        # ReLU must precede the prior combine. Net / prior layer-3 blocks are
        # stacked along K (zero-padded), so only aligned ref views are sliced.
        b3n = slab_ref[brow + 2:brow + 3, 0:eo].astype(f32)
        b3p = slab_ref[brow + 3:brow + 4, 0:eo].astype(f32)
        o_net = jnp.dot(hb, w3_ref[0:width, :],
                        preferred_element_type=f32) + b3n
        o_pri = jnp.dot(hb, w3_ref[width:2 * width, :],
                        preferred_element_type=f32) + b3p
        out = jnp.maximum(o_net, 0.0) + prior_scale * jnp.maximum(o_pri, 0.0)

    out_ref[...] = out.astype(out_ref.dtype)


# --------------------------------- wrapper ---------------------------------- #
def ensemble_with_prior_forward(x, packed_params, meta):
    """x: (B, R, C). Returns (B, E, O) float32."""
    E, O = meta["E"], meta["O"]
    d_in, d_in_pad = meta["d_in"], meta["d_in_pad"]
    width, eo = meta["width"], meta["eo"]
    param_dtype = meta["param_dtype"]
    slab, w3 = packed_params

    B = x.shape[0]
    xf = x.reshape(B, d_in).astype(param_dtype)

    kernel = functools.partial(
        _ensemble_prior_kernel,
        d_in=d_in, d_in_pad=d_in_pad, width=width, eo=eo,
        prior_scale=meta["prior_scale"],
        final_activation=meta["final_activation"],
        dot_dtype=param_dtype)

    flops = 2 * B * (d_in * width + width * width + w3.shape[0] * eo)
    bytes_accessed = int(xf.size * xf.dtype.itemsize
                         + slab.size * slab.dtype.itemsize
                         + w3.size * w3.dtype.itemsize
                         + B * eo * 4)
    cost = pl.CostEstimate(flops=flops, transcendentals=0,
                           bytes_accessed=bytes_accessed)

    vmem = lambda: pl.BlockSpec(memory_space=pltpu.MemorySpace.VMEM)
    out = pl.pallas_call(
        kernel,
        out_shape=jax.ShapeDtypeStruct((B, eo), jnp.float32),
        in_specs=[vmem(), vmem(), vmem()],
        out_specs=vmem(),
        cost_estimate=cost,
    )(xf, slab, w3)

    # (B, E*O) -> (B, E, O): free metadata reshape, no transpose kernel.
    return out.reshape(B, E, O)


# --------------------------- parameter creation ----------------------------- #
def make_single_network_params(key, input_size, output_size, hidden_size,
                               ensemble_size):
    """EnsembleLinear params: W (E, in, out), b (E, 1, out).

    First two layers: uniform(-1/sqrt(fan_in), 1/sqrt(fan_in)) (nn.Linear-like).
    Last layer: trunc_normal(mean=0.5, std=1, a=0.001, b=2); bias = 0.01
    (mirrors init_weights in make_single_network)."""
    ks = jax.random.split(key, 3)

    def lin(k, fan_in, fan_out):
        kw, kb = jax.random.split(k)
        bound = 1.0 / jnp.sqrt(jnp.float32(fan_in))
        w = jax.random.uniform(kw, (ensemble_size, fan_in, fan_out),
                               jnp.float32, -bound, bound)
        b = jax.random.uniform(kb, (ensemble_size, 1, fan_out),
                               jnp.float32, -bound, bound)
        return w, b

    w1, b1 = lin(ks[0], input_size, hidden_size)
    w2, b2 = lin(ks[1], hidden_size, hidden_size)
    lo, hi = (0.001 - 0.5) / 1.0, (2.0 - 0.5) / 1.0
    w3 = 0.5 + jax.random.truncated_normal(
        ks[2], lo, hi,
        (ensemble_size, hidden_size, output_size)).astype(jnp.float32)
    b3 = jnp.full((ensemble_size, 1, output_size), 0.01, jnp.float32)
    return (w1, b1, w2, b2, w3, b3)


# ----------------------------- pure-JAX reference --------------------------- #
def _reference_forward(x, params, prior_params, prior_scale,
                       final_activation=False):
    xf = x.reshape(x.shape[0], -1).astype(jnp.float32)

    def mlp(p):
        w1, b1, w2, b2, w3, b3 = p
        h = jnp.maximum(jnp.einsum('bd,edh->ebh', xf, w1) + b1, 0.0)
        h = jnp.maximum(jnp.einsum('ebd,edh->ebh', h, w2) + b2, 0.0)
        o = jnp.einsum('ebd,edo->ebo', h, w3) + b3
        if final_activation:
            o = jnp.maximum(o, 0.0)
        return o

    v = mlp(params)
    pv = mlp(prior_params)
    return jnp.swapaxes(v + prior_scale * pv, 0, 1)


# ----------------------------------- main ------------------------------------ #
if __name__ == "__main__":
    # Small DeepSea-like problem.
    B, R, C = 8, 8, 8                 # batch, board rows, board cols
    input_size = R * C                # Flatten(start_dim=-2)
    output_size = 2                   # num actions
    hidden_size = 32
    ensemble_size = 4
    prior_scale = 3.0

    key = jax.random.PRNGKey(0)
    k_x, k_net, k_prior = jax.random.split(key, 3)

    x = jax.random.normal(k_x, (B, R, C), jnp.float32)
    params = make_single_network_params(k_net, input_size, output_size,
                                        hidden_size, ensemble_size)
    prior_params = make_single_network_params(k_prior, input_size, output_size,
                                              hidden_size, ensemble_size)

    ok = True
    for final_activation in (False, True):
        ref = _reference_forward(x, params, prior_params, prior_scale,
                                 final_activation)
        for param_dtype, rtol, atol in ((jnp.float32, 1e-4, 1e-4),
                                        (jnp.bfloat16, 3e-2, 3e-2)):
            packed, meta = pack_ensemble_prior_params(
                params, prior_params, prior_scale, final_activation,
                param_dtype=param_dtype)
            out = ensemble_with_prior_forward(x, packed, meta)
            out = jax.block_until_ready(out)
            assert out.shape == (B, ensemble_size, output_size), out.shape
            if not bool(jnp.allclose(out, ref, rtol=rtol, atol=atol)):
                ok = False
                max_err = float(jnp.max(jnp.abs(out - ref)))
                print(f"MISMATCH final_activation={final_activation} "
                      f"dtype={jnp.dtype(param_dtype).name} "
                      f"max_abs_err={max_err}")

    if ok:
        print("KERNEL_OK")
</pallas_src>

<mosaic_0001>
module attributes {stable_mosaic.version = 11 : i64} {
  func.func @_ensemble_prior_kernel(%arg0: memref<8x64xf32, #tpu.memory_space<vmem>>, %arg1: memref<324x256xf32, #tpu.memory_space<vmem>>, %arg2: memref<256x8xf32, #tpu.memory_space<vmem>>, %arg3: memref<8x8xf32, #tpu.memory_space<vmem>>) attributes {dimension_semantics = [], scalar_prefetch = 0 : i64, scratch_operands = 0 : i64, tpu.core_type = #tpu.core_type<tc>} {
    %c0 = arith.constant 0 : index
    %c0_0 = arith.constant 0 : index
    %0 = vector.load %arg0[%c0, %c0_0] : memref<8x64xf32, #tpu.memory_space<vmem>>, vector<8x64xf32>
    %c0_1 = arith.constant 0 : index
    %c0_2 = arith.constant 0 : index
    %1 = vector.load %arg1[%c0_1, %c0_2] : memref<324x256xf32, #tpu.memory_space<vmem>>, vector<64x256xf32>
    %c64 = arith.constant 64 : index
    %c0_3 = arith.constant 0 : index
    %2 = vector.load %arg1[%c64, %c0_3] : memref<324x256xf32, #tpu.memory_space<vmem>>, vector<256x256xf32>
    %c320 = arith.constant 320 : index
    %c0_4 = arith.constant 0 : index
    %3 = vector.load %arg1[%c320, %c0_4] : memref<324x256xf32, #tpu.memory_space<vmem>>, vector<1x256xf32>
    %c321 = arith.constant 321 : index
    %c0_5 = arith.constant 0 : index
    %4 = vector.load %arg1[%c321, %c0_5] : memref<324x256xf32, #tpu.memory_space<vmem>>, vector<1x256xf32>
    %cst = arith.constant dense<0.000000e+00> : vector<8x256xf32>
    %5 = tpu.matmul %0, %1, %cst {dimension_numbers = #tpu.dot_dimension_numbers<[1], [0], [0], [1], [0, 0, 1, 1], [], []>, precision = #tpu.contract_precision<fp32>} : vector<8x64xf32>, vector<64x256xf32>, vector<8x256xf32> -> vector<8x256xf32>
    %6 = vector.broadcast %3 : vector<1x256xf32> to vector<8x256xf32>
    %7 = arith.addf %5, %6 : vector<8x256xf32>
    %cst_6 = arith.constant 0.000000e+00 : f32
    %8 = vector.broadcast %cst_6 : f32 to vector<8x256xf32>
    %9 = arith.maximumf %7, %8 : vector<8x256xf32>
    %cst_7 = arith.constant dense<0.000000e+00> : vector<8x256xf32>
    %10 = tpu.matmul %9, %2, %cst_7 {dimension_numbers = #tpu.dot_dimension_numbers<[1], [0], [0], [1], [0, 0, 1, 1], [], []>, precision = #tpu.contract_precision<fp32>} : vector<8x256xf32>, vector<256x256xf32>, vector<8x256xf32> -> vector<8x256xf32>
    %11 = vector.broadcast %4 : vector<1x256xf32> to vector<8x256xf32>
    %12 = arith.addf %10, %11 : vector<8x256xf32>
    %cst_8 = arith.constant 0.000000e+00 : f32
    %13 = vector.broadcast %cst_8 : f32 to vector<8x256xf32>
    %14 = arith.maximumf %12, %13 : vector<8x256xf32>
    %c322 = arith.constant 322 : index
    %c0_9 = arith.constant 0 : index
    %15 = vector.load %arg1[%c322, %c0_9] : memref<324x256xf32, #tpu.memory_space<vmem>>, vector<1x8xf32>
    %c0_10 = arith.constant 0 : index
    %c0_11 = arith.constant 0 : index
    %16 = vector.load %arg2[%c0_10, %c0_11] : memref<256x8xf32, #tpu.memory_space<vmem>>, vector<256x8xf32>
    %cst_12 = arith.constant dense<0.000000e+00> : vector<8x8xf32>
    %17 = tpu.matmul %14, %16, %cst_12 {dimension_numbers = #tpu.dot_dimension_numbers<[1], [0], [0], [1], [0, 0, 1, 1], [], []>, precision = #tpu.contract_precision<fp32>} : vector<8x256xf32>, vector<256x8xf32>, vector<8x8xf32> -> vector<8x8xf32>
    %18 = vector.broadcast %15 : vector<1x8xf32> to vector<8x8xf32>
    %19 = arith.addf %17, %18 : vector<8x8xf32>
    %c0_13 = arith.constant 0 : index
    %c0_14 = arith.constant 0 : index
    %20 = vector.load %arg3[%c0_13, %c0_14] : memref<8x8xf32, #tpu.memory_space<vmem>>, vector<8x8xf32>
    tpu.vector_store %arg3[%c0_13, %c0_14], %19 {strides = array<i32>} : memref<8x8xf32, #tpu.memory_space<vmem>>, vector<8x8xf32>,
    return
  }
}

</mosaic_0001>

<bundles_post_ra>
// kernel: tpu_custom_call.1
= control target key start
LH: loop header
LB: loop body
LE: loop exit
PB: predicated region body
PF: predicated region fallthrough
CT: control target
= control target key end

     0   :  { %8 = vsyncpa [#allocation3], 0  ;;  %s4650_s0 = inlined_call_operand.vmem [shape: f32[8,64], index: 0, kind: input, shape index: {}]   ;;  %s4651_s1 = inlined_call_operand.hbm [shape: f32[324,256], index: 1, kind: input, shape index: {}]   ;;  %s4652_s2 = inlined_call_operand.vmem [shape: f32[256,8], index: 2, kind: input, shape index: {}]   ;;  %s4653_s3 = inlined_call_operand.hbm [shape: f32[8,8], index: 3, kind: output, shape index: {}]  }
   0x1   :  { %9 = vsyncpa [#allocation4], 0  ;;  %s16_s14 = sshll.u32 %s4651_s1, 4  ;;  %s2762_s15 = smov [#allocation2]   ;;  %s17_s14 = int_to_ptr.hbm [resolvable:$true] %s16_s14 }
   0x2   :  { %s18_s16 = sshll.u32 %s2762_s15, 4  ;;  %s2763_s17 = smov 256   ;;  %s19_s16 = int_to_ptr.vmem [resolvable:$true] %s18_s16 }
   0x3   :  { %s2764_s18 = smov 16  }
   0x4   :  { %24 = dma.hbm_to_vmem [thread:$0]  %s17_s14, 10496, %s19_s16, [#allocation3], %s2763_s17, %s2763_s17, %s2764_s18  }
   0x5   :  { %2758 = dma.done.wait [#allocation3], 10496  }
   0x6   :  { %2759 = vsyncadd [#allocation3], 4294956800  ;;  %v46_v0 = vld [vmem:[#allocation2 + $0x70] sm:$0xff]  ;;  %v44_v1 = vld [vmem:[#allocation2 + $0x60] sm:$0xff]  ;;  %vm121_vm0 = vcmask 523264   ;;  %s2696_s28 = sshll.u32 %s4653_s3, 4  ;;  %s2697_s28 = int_to_ptr.hbm [resolvable:$true] %s2696_s28 }
   0x7   :  { %v42_v2 = vld [vmem:[#allocation2 + $0x50] sm:$0xff]  ;;  %v2789_v3 = vand.u32 4294901760, %v46_v0  ;;  %v2791_v4 = vand.u32 4294901760, %v44_v1  ;;  %v40_v6 = vld [vmem:[#allocation2 + $0x40] sm:$0xff]  ;;  %v47_v22 = vld [vmem:[#allocation2 + $0x78] sm:$0xff]  ;;  %vm2687_vm1 = vcmask 64512  }
   0x8   :  { %v2793_v5 = vand.u32 4294901760, %v42_v2  ;;  %v38_v7 = vld [vmem:[#allocation2 + $0x30] sm:$0xff]  ;;  %v36_v8 = vld [vmem:[#allocation2 + $0x20] sm:$0xff]  ;;  %v2795_v9 = vand.u32 4294901760, %v40_v6  ;;  %v45_v30 = vld [vmem:[#allocation2 + $0x68] sm:$0xff]  ;;  %v2848_v34 = vand.u32 4294901760, %v47_v22 }
   0x9   :  { %v2797_v10 = vand.u32 4294901760, %v38_v7  ;;  %v2799_v11 = vand.u32 4294901760, %v36_v8  ;;  %v34_v12 = vld [vmem:[#allocation2 + $0x10] sm:$0xff]  ;;  %v32_v13 = vld [vmem:[#allocation2] sm:$0xff]  ;;  %v2802_v14 = vsub.f32 %v46_v0, %v2789_v3  ;;  %134 = vmatpush.msra.mxu0 %v2789_v3  ;;  %v2806_v15 = vsub.f32 %v44_v1, %v2791_v4  ;;  %266 = vmatpush.msra.mxu3 %v2789_v3  ;;  %v43_v36 = vld [vmem:[#allocation2 + $0x58] sm:$0xff] }
   0xa   :  { %v2810_v16 = vsub.f32 %v42_v2, %v2793_v5  ;;  %v2812_v17 = vand.u32 4294901760, %v34_v12  ;;  %v2815_v18 = vsub.f32 %v40_v6, %v2795_v9  ;;  %v2823_v21 = vand.u32 4294901760, %v32_v13  ;;  %v41_v41 = vld [vmem:[#allocation2 + $0x48] sm:$0xff]  ;;  %v31_v42 = vld [vmem:[%s4650_s0] sm:$0xff]  ;;  %v39_v43 = vld [vmem:[#allocation2 + $0x38] sm:$0xff] }
   0xb   :  { %v2818_v19 = vsub.f32 %v38_v7, %v2797_v10  ;;  %v2821_v20 = vsub.f32 %v36_v8, %v2799_v11  ;;  %229 = vmatpush.msra.mxu2 %v2802_v14  ;;  %136 = vmatpush.msra.mxu0 %v2791_v4  ;;  %v168_v23 = vand.u32 4294901760, %v2802_v14  ;;  %v174_v24 = vand.u32 4294901760, %v2806_v15  ;;  %v37_v55 = vld [vmem:[#allocation2 + $0x28] sm:$0xff]  ;;  %v35_v0 = vld [vmem:[#allocation2 + $0x18] sm:$0xff] }
   0xc   :  { %v180_v25 = vand.u32 4294901760, %v2810_v16  ;;  %268 = vmatpush.msra.mxu3 %v2791_v4  ;;  %v186_v26 = vand.u32 4294901760, %v2815_v18  ;;  %v2834_v28 = vsub.f32 %v34_v12, %v2812_v17  ;;  %v2852_v35 = vsub.f32 %v32_v13, %v2823_v21 }
   0xd   :  { %v192_v27 = vand.u32 4294901760, %v2818_v19  ;;  %v198_v29 = vand.u32 4294901760, %v2821_v20  ;;  %232 = vmatpush.msra.mxu2 %v2806_v15  ;;  %v169_v31 = vsub.f32 %v2802_v14, %v168_v23  ;;  %138 = vmatpush.msra.mxu0 %v2793_v5  ;;  %v175_v32 = vsub.f32 %v2806_v15, %v174_v24 }
   0xe   :  { %v181_v33 = vsub.f32 %v2810_v16, %v180_v25  ;;  %270 = vmatpush.msra.mxu3 %v2793_v5  ;;  %v187_v39 = vsub.f32 %v2815_v18, %v186_v26  ;;  %v2859_v40 = vand.u32 4294901760, %v45_v30  ;;  %v204_v46 = vand.u32 4294901760, %v2834_v28 }
   0xf   :  { %v170_v37 = vand.u32 4294901760, %v169_v31  ;;  %235 = vmatpush.msra.mxu2 %v2810_v16  ;;  %v176_v38 = vand.u32 4294901760, %v175_v32  ;;  %140 = vmatpush.msra.mxu0 %v2795_v9  ;;  %v193_v44 = vsub.f32 %v2818_v19, %v192_v27  ;;  %v199_v45 = vsub.f32 %v2821_v20, %v198_v29 }
  0x10   :  { %272 = vmatpush.msra.mxu3 %v2795_v9  ;;  %v182_v47 = vand.u32 4294901760, %v181_v33  ;;  %v2874_v48 = vsub.f32 %v47_v22, %v2848_v34  ;;  %v2876_v49 = vand.u32 4294901760, %v43_v36  ;;  %v2879_v50 = vsub.f32 %v45_v30, %v2859_v40  ;;  %v33_v30 = vld [vmem:[#allocation2 + $0x8] sm:$0xff] }
  0x11   :  { %171 = vmatpush.msra.mxu1 %v170_v37  ;;  %238 = vmatpush.msra.mxu2 %v2815_v18  ;;  %v210_v51 = vand.u32 4294901760, %v2852_v35  ;;  %v2884_v52 = vand.u32 4294901760, %v41_v41  ;;  %v123_v53 = vsel %vm121_vm0, %v31_v42, 0  ;;  %v2887_v54 = vand.u32 4294901760, %v39_v43 }
  0x12   :  { %142 = vmatpush.msra.mxu0 %v2797_v10  ;;  %274 = vmatpush.msra.mxu3 %v2797_v10  ;;  %v188_v56 = vand.u32 4294901760, %v187_v39  ;;  %v405_v57 = vand.u32 4294901760, %v2874_v48  ;;  %v411_v58 = vand.u32 4294901760, %v2879_v50  ;;  %v2893_v59 = vsub.f32 %v43_v36, %v2876_v49 }
  0x13   :  { %177 = vmatpush.msra.mxu1 %v176_v38  ;;  %241 = vmatpush.msra.mxu2 %v2818_v19  ;;  %v194_v60 = vand.u32 4294901760, %v193_v44  ;;  %v205_v61 = vsub.f32 %v2834_v28, %v204_v46  ;;  %v2900_v62 = vand.u32 4294901760, %v123_v53  ;;  %v2903_v63 = vsub.f32 %v41_v41, %v2884_v52 }
  0x14   :  { %144 = vmatpush.msra.mxu0 %v2799_v11  ;;  %276 = vmatpush.msra.mxu3 %v2799_v11  ;;  %v406_v1 = vsub.f32 %v2874_v48, %v405_v57  ;;  %v412_v2 = vsub.f32 %v2879_v50, %v411_v58  ;;  %v417_v6 = vand.u32 4294901760, %v2893_v59  ;;  %v2913_v7 = vand.u32 4294901760, %v37_v55 }
  0x15   :  { %183 = vmatpush.msra.mxu1 %v182_v47  ;;  %244 = vmatpush.msra.mxu2 %v2821_v20  ;;  %v200_v8 = vand.u32 4294901760, %v199_v45  ;;  %v211_v12 = vsub.f32 %v2852_v35, %v210_v51  ;;  %v2921_v13 = vsub.f32 %v123_v53, %v2900_v62  ;;  %v2924_v22 = vsub.f32 %v39_v43, %v2887_v54  ;;  %v74_v20 = vld [vmem:[#allocation2 + $0x150] sm:$0xff] }
  0x16   :  { %146 = vmatpush.msra.mxu0 %v2812_v17  ;;  %278 = vmatpush.msra.mxu3 %v2812_v17  ;;  %v407_v31 = vand.u32 4294901760, %v406_v1  ;;  %v418_v32 = vsub.f32 %v2893_v59, %v417_v6  ;;  %v423_v33 = vand.u32 4294901760, %v2903_v63  ;;  %v2931_v36 = vand.u32 4294901760, %v35_v0  ;;  %v62_v1 = vld [vmem:[#allocation2 + $0xf0] sm:$0xff] }
  0x17   :  { %189 = vmatpush.msra.mxu1 %v188_v56  ;;  %247 = vmatpush.msra.mxu2 %v2834_v28  ;;  %v2936_v37 = vand.u32 4294901760, %v2921_v13  ;;  %v206_v38 = vand.u32 4294901760, %v205_v61  ;;  %v413_v39 = vand.u32 4294901760, %v412_v2  ;;  %v2940_v41 = vsub.f32 %v37_v55, %v2913_v7 }
  0x18   :  { %148 = vmatpush.msra.mxu0 %v2823_v21  ;;  %280 = vmatpush.msra.mxu3 %v2823_v21  ;;  %v2942_v42 = vand.u32 4294901760, %v33_v30  ;;  %v212_v43 = vand.u32 4294901760, %v211_v12  ;;  %v429_v44 = vand.u32 4294901760, %v2924_v22  ;;  %v419_v45 = vand.u32 4294901760, %v418_v32 }
  0x19   :  { %195 = vmatpush.msra.mxu1 %v194_v60  ;;  %250 = vmatpush.msra.mxu2 %v2852_v35  ;;  %v424_v47 = vsub.f32 %v2903_v63, %v423_v33  ;;  %v152_v53 = vsub.f32 %v2921_v13, %v2936_v37  ;;  %v2954_v55 = vsub.f32 %v35_v0, %v2931_v36  ;;  %v435_v14 = vand.u32 4294901760, %v2940_v41 }
  0x1a   :  { %299 = vmatpush.msrb.mxu0 %v168_v23  ;;  %408 = vmatpush.msrb.mxu3 %v407_v31  ;;  %v2961_v23 = vsub.f32 %v33_v30, %v2942_v42  ;;  %v430_v56 = vsub.f32 %v2924_v22, %v429_v44  ;;  %v3099_v32 = vand.u32 4294901760, %v62_v1 }
  0x1b   :  { %371 = vmatpush.msrb.mxu2 %v2848_v34  ;;  %201 = vmatpush.msra.mxu1 %v200_v8  ;;  %v425_v15 = vand.u32 4294901760, %v424_v47  ;;  %v441_v60 = vand.u32 4294901760, %v2954_v55  ;;  %v436_v16 = vsub.f32 %v2940_v41, %v435_v14 }
  0x1c   :  { %303 = vmatpush.msrb.mxu0 %v174_v24  ;;  %414 = vmatpush.msrb.mxu3 %v413_v39  ;;  %v153_v24 = vand.u32 4294901760, %v152_v53  ;;  %v431_v61 = vand.u32 4294901760, %v430_v56  ;;  %v54_v53 = vld [vmem:[#allocation2 + $0xb0] sm:$0xff] }
  0x1d   :  { %373 = vmatpush.msrb.mxu2 %v2859_v40  ;;  %207 = vmatpush.msra.mxu1 %v206_v38  ;;  %v437_v18 = vand.u32 4294901760, %v436_v16  ;;  %v58_v38 = vld [vmem:[#allocation2 + $0xd0] sm:$0xff] }
  0x1e   :  { %307 = vmatpush.msrb.mxu0 %v180_v25  ;;  %420 = vmatpush.msrb.mxu3 %v419_v45  ;;  %v447_v25 = vand.u32 4294901760, %v2961_v23  ;;  %v3122_v45 = vsub.f32 %v62_v1, %v3099_v32  ;;  %v3124_v47 = vand.u32 4294901760, %v58_v38 }
  0x1f   :  { %375 = vmatpush.msrb.mxu2 %v2876_v49  ;;  %213 = vmatpush.msra.mxu1 %v212_v43 }
  0x20   :  { %253 = vmatmul.f32.vlgmr.msra.gmra.mxu2 %v2921_v13  ;;  %311 = vmatpush.msrb.mxu0 %v186_v26 }
  0x21   :  { %342 = vmatpush.msrb.mxu1 %v2789_v3  ;;  %377 = vmatpush.msrb.mxu2 %v2884_v52  ;;  %v442_v3 = vsub.f32 %v2954_v55, %v441_v60 }
  0x22   :  { %426 = vmatpush.msrb.mxu3 %v425_v15  ;;  %154 = vmatmul.f32.vlgmr.msra.gmra.mxu0 %v153_v24  ;;  %v3140_v15 = vand.u32 4294901760, %v54_v53 }
  0x23   :  { %344 = vmatpush.msrb.mxu1 %v2791_v4  ;;  %379 = vmatpush.msrb.mxu2 %v2887_v54  ;;  %v448_v4 = vsub.f32 %v2961_v23, %v447_v25 }
  0x24   :  { %284 = vmatmul.f32.vlgmr.msra.gmra.mxu3 %v2936_v37  ;;  %315 = vmatpush.msrb.mxu0 %v192_v27  ;;  %v72_v27 = vld [vmem:[#allocation2 + $0x140] sm:$0xff] }
  0x25   :  { %346 = vmatpush.msrb.mxu1 %v2793_v5  ;;  %381 = vmatpush.msrb.mxu2 %v2913_v7  ;;  %v443_v5 = vand.u32 4294901760, %v442_v3  ;;  %v449_v19 = vand.u32 4294901760, %v448_v4 }
  0x26   :  { %432 = vmatpush.msrb.mxu3 %v431_v61  ;;  %215 = vmatmul.f32.vlgmr.msra.gmra.mxu1 %v2900_v62  ;;  %v3148_v61 = vsub.f32 %v58_v38, %v3124_v47 }
  0x27   :  { %348 = vmatpush.msrb.mxu1 %v2795_v9  ;;  %319 = vmatpush.msrb.mxu0 %v198_v29  ;;  %v78_v9 = vld [vmem:[#allocation2 + $0x170] sm:$0xff] }
  0x28   :  { %383 = vmatpush.msrb.mxu2 %v2931_v36  ;;  %438 = vmatpush.msrb.mxu3 %v437_v18  ;;  %v70_v29 = vld [vmem:[#allocation2 + $0x130] sm:$0xff] }
  0x29   :  { %350 = vmatpush.msrb.mxu1 %v2797_v10  ;;  %323 = vmatpush.msrb.mxu0 %v204_v46  ;;  %v76_v10 = vld [vmem:[#allocation2 + $0x160] sm:$0xff]  ;;  %v50_v18 = vld [vmem:[#allocation2 + $0x90] sm:$0xff] }
  0x2a   :  { %385 = vmatpush.msrb.mxu2 %v2942_v42  ;;  %444 = vmatpush.msrb.mxu3 %v443_v5  ;;  %v3015_v26 = vand.u32 4294901760, %v76_v10 }
  0x2b   :  { %352 = vmatpush.msrb.mxu1 %v2799_v11  ;;  %327 = vmatpush.msrb.mxu0 %v210_v51  ;;  %v3011_v11 = vand.u32 4294901760, %v78_v9 }
  0x2c   :  { %536 = vmatpush.msra.mxu2 %v405_v57  ;;  %450 = vmatpush.msrb.mxu3 %v449_v19  ;;  %v3033_v28 = vsub.f32 %v76_v10, %v3015_v26  ;;  %v3165_v10 = vsub.f32 %v54_v53, %v3140_v15  ;;  %v106_v53 = vld [vmem:[#allocation2 + $0x250] sm:$0xff] }
  0x2d   :  { %354 = vmatpush.msrb.mxu1 %v2812_v17  ;;  %329 = vmatmul.f32.vlgmr.msrb.gmra.mxu0 %v2900_v62  ;;  %v3022_v17 = vand.u32 4294901760, %v74_v20 }
  0x2e   :  { %466 = vmatpush.msra.mxu0 %v2874_v48  ;;  %540 = vmatpush.msra.mxu2 %v411_v58  ;;  %v3047_v48 = vand.u32 4294901760, %v70_v29 }
  0x2f   :  { %579 = vmatpush.msra.mxu3 %v2848_v34  ;;  %356 = vmatpush.msrb.mxu1 %v2823_v21  ;;  %v3027_v21 = vsub.f32 %v78_v9, %v3011_v11  ;;  %v3041_v35 = vsub.f32 %v74_v20, %v3022_v17  ;;  %v48_v20 = vld [vmem:[#allocation2 + $0x80] sm:$0xff] }
  0x30   :  { %358 = vmatmul.f32.vlgmr.msrb.gmra.mxu1 %v2900_v62  ;;  %469 = vmatpush.msra.mxu0 %v2879_v50  ;;  %v655_v50 = vand.u32 4294901760, %v3033_v28 }
  0x31   :  { %503 = vmatpush.msra.mxu1 %v2848_v34  ;;  %544 = vmatpush.msra.mxu2 %v417_v6  ;;  %v3036_v34 = vand.u32 4294901760, %v72_v27  ;;  %v649_v46 = vand.u32 4294901760, %v3027_v21  ;;  %v661_v58 = vand.u32 4294901760, %v3041_v35 }
  0x32   :  { %581 = vmatpush.msra.mxu3 %v2859_v40  ;;  %472 = vmatpush.msra.mxu0 %v2893_v59  ;;  %v64_v59 = vld [vmem:[#allocation2 + $0x100] sm:$0xff] }
  0x33   :  { %505 = vmatpush.msra.mxu1 %v2859_v40  ;;  %548 = vmatpush.msra.mxu2 %v423_v33  ;;  %v68_v40 = vld [vmem:[#allocation2 + $0x120] sm:$0xff]  ;;  %v3056_v51 = vsub.f32 %v72_v27, %v3036_v34  ;;  %v3086_v8 = vand.u32 4294901760, %v64_v59  ;;  %v662_v12 = vsub.f32 %v3041_v35, %v661_v58 }
  0x34   :  { %583 = vmatpush.msra.mxu3 %v2876_v49  ;;  %391 = vmatmul.f32.vlgmr.msrb.gmra.mxu2 %v153_v24  ;;  %v3058_v57 = vand.u32 4294901760, %v68_v40  ;;  %v52_v24 = vld [vmem:[#allocation2 + $0xa0] sm:$0xff] }
  0x35   :  { %475 = vmatpush.msra.mxu0 %v2903_v63  ;;  %507 = vmatpush.msra.mxu1 %v2876_v49  ;;  %v66_v49 = vld [vmem:[#allocation2 + $0x110] sm:$0xff]  ;;  %v3070_v63 = vsub.f32 %v70_v29, %v3047_v48  ;;  %v667_v2 = vand.u32 4294901760, %v3056_v51  ;;  %v3160_v9 = vand.u32 4294901760, %v52_v24 }
  0x36   :  { %552 = vmatpush.msra.mxu2 %v429_v44  ;;  %585 = vmatpush.msra.mxu3 %v2884_v52  ;;  %v3072_v0 = vand.u32 4294901760, %v66_v49  ;;  %v3084_v6 = vsub.f32 %v68_v40, %v3058_v57  ;;  %v56_v44 = vld [vmem:[#allocation2 + $0xc0] sm:$0xff]  ;;  %v709_v40 = vand.u32 4294901760, %v3148_v61 }
  0x37   :  { %452 = vmatmul.f32.vlgmr.msrb.gmra.mxu3 %v2900_v62  ;;  %478 = vmatpush.msra.mxu0 %v2924_v22  ;;  %v60_v22 = vld [vmem:[#allocation2 + $0xe0] sm:$0xff]  ;;  %v673_v30 = vand.u32 4294901760, %v3070_v63 }
  0x38   :  { %509 = vmatpush.msra.mxu1 %v2884_v52  ;;  %556 = vmatpush.msra.mxu2 %v435_v14  ;;  %v650_v52 = vsub.f32 %v3027_v21, %v649_v46  ;;  %v3097_v31 = vsub.f32 %v66_v49, %v3072_v0  ;;  %v679_v39 = vand.u32 4294901760, %v3084_v6  ;;  %v3112_v43 = vand.u32 4294901760, %v60_v22 }
  0x39   :  { %587 = vmatpush.msra.mxu3 %v2887_v54  ;;  %481 = vmatpush.msra.mxu0 %v2940_v41  ;;  %v3110_v41 = vsub.f32 %v64_v59, %v3086_v8  ;;  %v3172_v49 = vand.u32 4294901760, %v50_v18 }
  0x3a   :  { %511 = vmatpush.msra.mxu1 %v2887_v54  ;;  %560 = vmatpush.msra.mxu2 %v441_v60  ;;  %v656_v54 = vsub.f32 %v3033_v28, %v655_v50  ;;  %v680_v14 = vsub.f32 %v3084_v6, %v679_v39  ;;  %v3136_v56 = vsub.f32 %v60_v22, %v3112_v43  ;;  %v3184_v22 = vand.u32 4294901760, %v48_v20 }
  0x3b   :  { %589 = vmatpush.msra.mxu3 %v2913_v7  ;;  %484 = vmatpush.msra.mxu0 %v2954_v55 }
  0x3c   :  { %513 = vmatpush.msra.mxu1 %v2913_v7  ;;  %564 = vmatpush.msra.mxu2 %v447_v25  ;;  %v651_v7 = vand.u32 4294901760, %v650_v52  ;;  %v657_v33 = vand.u32 4294901760, %v656_v54  ;;  %v697_v25 = vand.u32 4294901760, %v3122_v45  ;;  %v681_v4 = vand.u32 4294901760, %v680_v14  ;;  %v110_v52 = vld [vmem:[#allocation2 + $0x270] sm:$0xff] }
  0x3d   :  { %591 = vmatpush.msra.mxu3 %v2931_v36  ;;  %566 = vmatmul.f32.vlgmr.msra.gmra.mxu2 %v2900_v62  ;;  %v703_v19 = vand.u32 4294901760, %v3136_v56 }
  0x3e   :  { %487 = vmatpush.msra.mxu0 %v2961_v23  ;;  %515 = vmatpush.msra.mxu1 %v2931_v36  ;;  %v668_v36 = vsub.f32 %v3056_v51, %v667_v2  ;;  %v691_v23 = vand.u32 4294901760, %v3110_v41  ;;  %v698_v29 = vsub.f32 %v3122_v45, %v697_v25 }
  0x3f   :  { %593 = vmatpush.msra.mxu3 %v2942_v42  ;;  %490 = vmatmul.f32.vlgmr.msra.gmra.mxu0 %v2921_v13  ;;  %v663_v13 = vand.u32 4294901760, %v662_v12  ;;  %v704_v1 = vsub.f32 %v3136_v56, %v703_v19  ;;  %v3182_v12 = vsub.f32 %v52_v24, %v3160_v9  ;;  %v3206_v24 = vsub.f32 %v48_v20, %v3184_v22 }
  0x40   :  { %595 = vmatmul.f32.vlgmr.msra.gmra.mxu3 %v2900_v62  ;;  %517 = vmatpush.msra.mxu1 %v2942_v42  ;;  %v674_v62 = vsub.f32 %v3070_v63, %v673_v30  ;;  %v685_v42 = vand.u32 4294901760, %v3097_v31  ;;  %v669_v55 = vand.u32 4294901760, %v668_v36  ;;  %v692_v5 = vsub.f32 %v3110_v41, %v691_v23 }
  0x41   :  { %521 = vmatmul.f32.vlgmr.msra.gmra.mxu1 %v2936_v37  ;;  %750 = vmatpush.msrb.mxu2 %v3027_v21  ;;  %v3128_v37 = vand.u32 4294901760, %v56_v44  ;;  %v699_v38 = vand.u32 4294901760, %v698_v29  ;;  %v710_v36 = vsub.f32 %v3148_v61, %v709_v40  ;;  %v4654_v14 = vand.u32 4294901760, %v3182_v12  ;;  %v98_v21 = vld [vmem:[#allocation2 + $0x210] sm:$0xff] }
  0x42   :  { %652 = vmatpush.msrb.mxu1 %v651_v7  ;;  %803 = vmatpush.msrb.mxu3 %v3011_v11  ;;  %v675_v60 = vand.u32 4294901760, %v674_v62  ;;  %v686_v16 = vsub.f32 %v3097_v31, %v685_v42  ;;  %v693_v54 = vand.u32 4294901760, %v692_v5  ;;  %v4655_v7 = vand.u32 4294901760, %v3165_v10 }
  0x43   :  { %753 = vmatpush.msrb.mxu2 %v3033_v28  ;;  %607 = vmatpush.msrb.mxu0 %v3011_v11  ;;  %v3153_v3 = vsub.f32 %v56_v44, %v3128_v37  ;;  %v3194_v44 = vsub.f32 %v50_v18, %v3172_v49  ;;  %v104_v18 = vld [vmem:[#allocation2 + $0x240] sm:$0xff]  ;;  %v4691_v28 = vand.u32 4294901760, %v3165_v10 }
  0x44   :  { %658 = vmatpush.msrb.mxu1 %v657_v33  ;;  %805 = vmatpush.msrb.mxu3 %v3015_v26  ;;  %v687_v27 = vand.u32 4294901760, %v686_v16  ;;  %v108_v33 = vld [vmem:[#allocation2 + $0x260] sm:$0xff]  ;;  %v722_v16 = vsub.f32 %v3165_v10, %v4655_v7 }
  0x45   :  { %756 = vmatpush.msrb.mxu2 %v3041_v35  ;;  %609 = vmatpush.msrb.mxu0 %v3015_v26  ;;  %v4657_v59 = vand.u32 4294901760, %v3153_v3  ;;  %v4656_v5 = vand.u32 4294901760, %v3194_v44 }
  0x46   :  { %664 = vmatpush.msrb.mxu1 %v663_v13  ;;  %807 = vmatpush.msrb.mxu3 %v3022_v17  ;;  %v3196_v13 = vand.u32 4294901760, %v110_v52 }
  0x47   :  { %759 = vmatpush.msrb.mxu2 %v3056_v51  ;;  %611 = vmatpush.msrb.mxu0 %v3022_v17  ;;  %v716_v62 = vsub.f32 %v3153_v3, %v4657_v59 }
  0x48   :  { %670 = vmatpush.msrb.mxu1 %v669_v55  ;;  %809 = vmatpush.msrb.mxu3 %v3036_v34  ;;  %v705_v55 = vand.u32 4294901760, %v704_v1  ;;  %v3218_v20 = vsub.f32 %v110_v52, %v3196_v13  ;;  %v728_v1 = vsub.f32 %v3182_v12, %v4654_v14 }
  0x49   :  { %762 = vmatpush.msrb.mxu2 %v3070_v63  ;;  %613 = vmatpush.msrb.mxu0 %v3036_v34  ;;  %v717_v29 = vand.u32 4294901760, %v716_v62  ;;  %v723_v62 = vand.u32 4294901760, %v722_v16  ;;  %v4693_v63 = vand.u32 4294901760, %v3194_v44 }
  0x4a   :  { %676 = vmatpush.msrb.mxu1 %v675_v60  ;;  %811 = vmatpush.msrb.mxu3 %v3047_v48  ;;  %v3208_v60 = vand.u32 4294901760, %v108_v33  ;;  %v990_v14 = vand.u32 4294901760, %v3218_v20  ;;  %v729_v16 = vand.u32 4294901760, %v728_v1 }
  0x4b   :  { %765 = vmatpush.msrb.mxu2 %v3084_v6  ;;  %615 = vmatpush.msrb.mxu0 %v3047_v48 }
  0x4c   :  { %682 = vmatpush.msrb.mxu1 %v681_v4  ;;  %813 = vmatpush.msrb.mxu3 %v3058_v57  ;;  %v711_v4 = vand.u32 4294901760, %v710_v36  ;;  %v3230_v52 = vsub.f32 %v108_v33, %v3208_v60  ;;  %v3232_v36 = vand.u32 4294901760, %v104_v18 }
  0x4d   :  { %768 = vmatpush.msrb.mxu2 %v3097_v31  ;;  %617 = vmatpush.msrb.mxu0 %v3058_v57  ;;  %v4694_v31 = vand.u32 4294901760, %v3206_v24 }
  0x4e   :  { %688 = vmatpush.msrb.mxu1 %v687_v27  ;;  %815 = vmatpush.msrb.mxu3 %v3072_v0  ;;  %v3220_v27 = vand.u32 4294901760, %v106_v53  ;;  %v3254_v59 = vsub.f32 %v104_v18, %v3232_v36 }
  0x4f   :  { %771 = vmatpush.msrb.mxu2 %v3110_v41  ;;  %619 = vmatpush.msrb.mxu0 %v3072_v0 }
  0x50   :  { %694 = vmatpush.msrb.mxu1 %v693_v54  ;;  %817 = vmatpush.msrb.mxu3 %v3086_v8  ;;  %v102_v54 = vld [vmem:[#allocation2 + $0x230] sm:$0xff]  ;;  %v3242_v7 = vsub.f32 %v106_v53, %v3220_v27 }
  0x51   :  { %774 = vmatpush.msrb.mxu2 %v3122_v45  ;;  %621 = vmatpush.msrb.mxu0 %v3086_v8  ;;  %v3244_v33 = vand.u32 4294901760, %v102_v54  ;;  %v90_v45 = vld [vmem:[#allocation2 + $0x1d0] sm:$0xff] }
  0x52   :  { %700 = vmatpush.msrb.mxu1 %v699_v38  ;;  %819 = vmatpush.msrb.mxu3 %v3099_v32  ;;  %v4658_v38 = vand.u32 4294901760, %v3206_v24  ;;  %v4660_v1 = vand.u32 4294901760, %v3242_v7 }
  0x53   :  { %777 = vmatpush.msrb.mxu2 %v3136_v56  ;;  %623 = vmatpush.msrb.mxu0 %v3099_v32 }
  0x54   :  { %706 = vmatpush.msrb.mxu1 %v705_v55  ;;  %821 = vmatpush.msrb.mxu3 %v3112_v43  ;;  %v734_v55 = vsub.f32 %v3194_v44, %v4656_v5  ;;  %v4659_v5 = vand.u32 4294901760, %v3230_v52 }
  0x55   :  { %780 = vmatpush.msrb.mxu2 %v3148_v61  ;;  %625 = vmatpush.msrb.mxu0 %v3112_v43 }
  0x56   :  { %712 = vmatpush.msrb.mxu1 %v711_v4  ;;  %823 = vmatpush.msrb.mxu3 %v3124_v47  ;;  %v740_v4 = vsub.f32 %v3206_v24, %v4658_v38  ;;  %v735_v53 = vand.u32 4294901760, %v734_v55  ;;  %v3264_v38 = vsub.f32 %v102_v54, %v3244_v33  ;;  %v1008_v55 = vand.u32 4294901760, %v3254_v59 }
  0x57   :  { %783 = vmatpush.msrb.mxu2 %v3153_v3  ;;  %627 = vmatpush.msrb.mxu0 %v3124_v47 }
  0x58   :  { %718 = vmatpush.msrb.mxu1 %v717_v29  ;;  %825 = vmatpush.msrb.mxu3 %v3128_v37  ;;  %v991_v29 = vsub.f32 %v3218_v20, %v990_v14  ;;  %v741_v18 = vand.u32 4294901760, %v740_v4  ;;  %v1014_v4 = vand.u32 4294901760, %v3264_v38 }
  0x59   :  { %786 = vmatpush.msrb.mxu2 %v3165_v10  ;;  %629 = vmatpush.msrb.mxu0 %v3128_v37 }
  0x5a   :  { %724 = vmatpush.msrb.mxu1 %v723_v62  ;;  %827 = vmatpush.msrb.mxu3 %v3140_v15  ;;  %v997_v62 = vsub.f32 %v3230_v52, %v4659_v5  ;;  %v992_v54 = vand.u32 4294901760, %v991_v29 }
  0x5b   :  { %789 = vmatpush.msrb.mxu2 %v3182_v12  ;;  %631 = vmatpush.msrb.mxu0 %v3140_v15 }
  0x5c   :  { %730 = vmatpush.msrb.mxu1 %v729_v16  ;;  %829 = vmatpush.msrb.mxu3 %v3160_v9  ;;  %v1003_v16 = vsub.f32 %v3242_v7, %v4660_v1  ;;  %v998_v5 = vand.u32 4294901760, %v997_v62  ;;  %v1015_v1 = vsub.f32 %v3264_v38, %v1014_v4 }
  0x5d   :  { %792 = vmatpush.msrb.mxu2 %v3194_v44  ;;  %633 = vmatpush.msrb.mxu0 %v3160_v9 }
  0x5e   :  { %736 = vmatpush.msrb.mxu1 %v735_v53  ;;  %831 = vmatpush.msrb.mxu3 %v3172_v49  ;;  %v1009_v53 = vsub.f32 %v3254_v59, %v1008_v55  ;;  %v1004_v29 = vand.u32 4294901760, %v1003_v16  ;;  %v1016_v62 = vand.u32 4294901760, %v1015_v1 }
  0x5f   :  { %795 = vmatpush.msrb.mxu2 %v3206_v24  ;;  %635 = vmatpush.msrb.mxu0 %v3172_v49 }
  0x60   :  { %742 = vmatpush.msrb.mxu1 %v741_v18  ;;  %833 = vmatpush.msrb.mxu3 %v3184_v22  ;;  %v1010_v18 = vand.u32 4294901760, %v1009_v53 }
  0x61   :  { %948 = vmatpush.msra.mxu2 %v3196_v13  ;;  %637 = vmatpush.msrb.mxu0 %v3184_v22 }
  0x62   :  { %911 = vmatpush.msra.mxu1 %v3011_v11  ;;  %993 = vmatpush.msra.mxu3 %v992_v54  ;;  %v100_v11 = vld [vmem:[#allocation2 + $0x220] sm:$0xff] }
  0x63   :  { %950 = vmatpush.msra.mxu2 %v3208_v60  ;;  %844 = vmatpush.msra.mxu0 %v649_v46  ;;  %v96_v46 = vld [vmem:[#allocation2 + $0x200] sm:$0xff] }
  0x64   :  { %913 = vmatpush.msra.mxu1 %v3015_v26  ;;  %999 = vmatpush.msra.mxu3 %v998_v5  ;;  %v3303_v26 = vand.u32 4294901760, %v100_v11  ;;  %v3349_v51 = vand.u32 4294901760, %v96_v46  ;;  %v84_v5 = vld [vmem:[#allocation2 + $0x1a0] sm:$0xff] }
  0x65   :  { %952 = vmatpush.msra.mxu2 %v3220_v27  ;;  %848 = vmatpush.msra.mxu0 %v655_v50  ;;  %v3413_v53 = vand.u32 4294901760, %v84_v5 }
  0x66   :  { %915 = vmatpush.msra.mxu1 %v3022_v17  ;;  %1005 = vmatpush.msra.mxu3 %v1004_v29  ;;  %v4690_v17 = vand.u32 4294901760, %v3153_v3  ;;  %v3342_v35 = vsub.f32 %v100_v11, %v3303_v26 }
  0x67   :  { %954 = vmatpush.msra.mxu2 %v3232_v36  ;;  %852 = vmatpush.msra.mxu0 %v661_v58  ;;  %v94_v58 = vld [vmem:[#allocation2 + $0x1f0] sm:$0xff] }
  0x68   :  { %917 = vmatpush.msra.mxu1 %v3036_v34  ;;  %1011 = vmatpush.msra.mxu3 %v1010_v18  ;;  %v3339_v34 = vand.u32 4294901760, %v98_v21  ;;  %v1020_v50 = vand.u32 4294901760, %v3342_v35  ;;  %v3361_v6 = vand.u32 4294901760, %v94_v58  ;;  %v82_v18 = vld [vmem:[#allocation2 + $0x190] sm:$0xff] }
  0x69   :  { %956 = vmatpush.msra.mxu2 %v3244_v33  ;;  %856 = vmatpush.msra.mxu0 %v667_v2 }
  0x6a   :  { %919 = vmatpush.msra.mxu1 %v3047_v48  ;;  %1017 = vmatpush.msra.mxu3 %v1016_v62  ;;  %v4692_v48 = vand.u32 4294901760, %v3182_v12 }
  0x6b   :  { %958 = vmatpush.msra.mxu2 %v3303_v26  ;;  %860 = vmatpush.msra.mxu0 %v673_v30  ;;  %v92_v30 = vld [vmem:[#allocation2 + $0x1e0] sm:$0xff] }
  0x6c   :  { %921 = vmatpush.msra.mxu1 %v3058_v57  ;;  %v3352_v57 = vsub.f32 %v98_v21, %v3339_v34  ;;  %v3425_v21 = vsub.f32 %v84_v5, %v3413_v53 }
  0x6d   :  { %864 = vmatpush.msra.mxu0 %v679_v39  ;;  %960 = vmatpush.msra.mxu2 %v3339_v34 }
  0x6e   :  { %923 = vmatpush.msra.mxu1 %v3072_v0  ;;  %v1021_v0 = vsub.f32 %v3342_v35, %v1020_v50  ;;  %v1026_v2 = vand.u32 4294901760, %v3352_v57 }
  0x6f   :  { %868 = vmatpush.msra.mxu0 %v685_v42  ;;  %962 = vmatpush.msra.mxu2 %v3349_v51  ;;  %v3376_v42 = vsub.f32 %v94_v58, %v3361_v6  ;;  %v1068_v58 = vand.u32 4294901760, %v3425_v21 }
  0x70   :  { %925 = vmatpush.msra.mxu1 %v3086_v8  ;;  %v3364_v8 = vsub.f32 %v96_v46, %v3349_v51  ;;  %v1027_v39 = vsub.f32 %v3352_v57, %v1026_v2  ;;  %v80_v46 = vld [vmem:[#allocation2 + $0x180] sm:$0xff] }
  0x71   :  { %872 = vmatpush.msra.mxu0 %v691_v23  ;;  %964 = vmatpush.msra.mxu2 %v3361_v6  ;;  %v3382_v23 = vand.u32 4294901760, %v90_v45 }
  0x72   :  { %927 = vmatpush.msra.mxu1 %v3099_v32  ;;  %v1022_v32 = vand.u32 4294901760, %v1021_v0  ;;  %v1032_v41 = vand.u32 4294901760, %v3364_v8 }
  0x73   :  { %876 = vmatpush.msra.mxu0 %v697_v25  ;;  %v88_v25 = vld [vmem:[#allocation2 + $0x1c0] sm:$0xff] }
  0x74   :  { %929 = vmatpush.msra.mxu1 %v3112_v43  ;;  %v3373_v43 = vand.u32 4294901760, %v92_v30  ;;  %1023 = vmatpush.msra.mxu3 %v1022_v32 }
  0x75   :  { %880 = vmatpush.msra.mxu0 %v703_v19  ;;  %v3390_v19 = vand.u32 4294901760, %v88_v25 }
  0x76   :  { %931 = vmatpush.msra.mxu1 %v3124_v47  ;;  %v1028_v47 = vand.u32 4294901760, %v1027_v39  ;;  %966 = vmatpush.msra.mxu2 %v3373_v43  ;;  %v3385_v56 = vsub.f32 %v92_v30, %v3373_v43 }
  0x77   :  { %884 = vmatpush.msra.mxu0 %v709_v40  ;;  %v86_v40 = vld [vmem:[#allocation2 + $0x1b0] sm:$0xff]  ;;  %v3406_v44 = vsub.f32 %v88_v25, %v3390_v19 }
  0x78   :  { %933 = vmatpush.msra.mxu1 %v3128_v37  ;;  %v1033_v37 = vsub.f32 %v3364_v8, %v1032_v41  ;;  %1029 = vmatpush.msra.mxu3 %v1028_v47  ;;  %v1044_v3 = vand.u32 4294901760, %v3385_v56 }
  0x79   :  { %888 = vmatpush.msra.mxu0 %v4690_v17  ;;  %968 = vmatpush.msra.mxu2 %v3382_v23  ;;  %v1056_v16 = vand.u32 4294901760, %v3406_v44  ;;  %v3422_v17 = vand.u32 4294901760, %v82_v18 }
  0x7a   :  { %935 = vmatpush.msra.mxu1 %v3140_v15  ;;  %v1038_v15 = vand.u32 4294901760, %v3376_v42  ;;  %v1034_v61 = vand.u32 4294901760, %v1033_v37 }
  0x7b   :  { %892 = vmatpush.msra.mxu0 %v4691_v28  ;;  %970 = vmatpush.msra.mxu2 %v3390_v19  ;;  %v1057_v62 = vsub.f32 %v3406_v44, %v1056_v16  ;;  %v3433_v0 = vsub.f32 %v82_v18, %v3422_v17 }
  0x7c   :  { %937 = vmatpush.msra.mxu1 %v3160_v9  ;;  %v3393_v9 = vsub.f32 %v90_v45, %v3382_v23  ;;  %v1039_v10 = vsub.f32 %v3376_v42, %v1038_v15  ;;  %1035 = vmatpush.msra.mxu3 %v1034_v61 }
  0x7d   :  { %896 = vmatpush.msra.mxu0 %v4692_v48  ;;  %v1058_v48 = vand.u32 4294901760, %v1057_v62  ;;  %v4661_v32 = vand.u32 4294901760, %v3433_v0 }
  0x7e   :  { %939 = vmatpush.msra.mxu1 %v3172_v49  ;;  %v1045_v49 = vsub.f32 %v3385_v56, %v1044_v3  ;;  %v1050_v12 = vand.u32 4294901760, %v3393_v9  ;;  %v1040_v24 = vand.u32 4294901760, %v1039_v10 }
  0x7f   :  { %900 = vmatpush.msra.mxu0 %v4693_v63  ;;  %v3430_v63 = vand.u32 4294901760, %v80_v46  ;;  %v1075_v37 = vsub.f32 %v3433_v0, %v4661_v32 }
  0x80   :  { %941 = vmatpush.msra.mxu1 %v3184_v22  ;;  %v3403_v22 = vand.u32 4294901760, %v86_v40  ;;  %v1046_v1 = vand.u32 4294901760, %v1045_v49  ;;  %v1051_v54 = vsub.f32 %v3393_v9, %v1050_v12  ;;  %1041 = vmatpush.msra.mxu3 %v1040_v24  ;;  %v113_v49 = vld [vmem:[#allocation2 + $0x280] ss:$8 sm:$0x3] }
  0x81   :  { %904 = vmatpush.msra.mxu0 %v4694_v31  ;;  %v1069_v31 = vsub.f32 %v3425_v21, %v1068_v58  ;;  %v3444_v39 = vsub.f32 %v80_v46, %v3430_v63  ;;  %v1076_v61 = vand.u32 4294901760, %v1075_v37  ;;  %v117_v24 = vperm.slane %v113_v49, 0 }
  0x82   :  { %972 = vmatpush.msra.mxu2 %v3403_v22  ;;  %v3416_v29 = vsub.f32 %v86_v40, %v3403_v22  ;;  %v1052_v11 = vand.u32 4294901760, %v1051_v54  ;;  %1047 = vmatpush.msra.mxu3 %v1046_v1 }
  0x83   :  { %v1070_v47 = vand.u32 4294901760, %v1069_v31  ;;  %v4662_v25 = vand.u32 4294901760, %v3444_v39 }
  0x84   :  { %974 = vmatpush.msra.mxu2 %v3413_v53  ;;  %v1062_v28 = vand.u32 4294901760, %v3416_v29  ;;  %1053 = vmatpush.msra.mxu3 %v1052_v11 }
  0x85   :  { %v1081_v10 = vsub.f32 %v3444_v39, %v4662_v25 }
  0x86   :  { %976 = vmatpush.msra.mxu2 %v3422_v17  ;;  %v1063_v30 = vsub.f32 %v3416_v29, %v1062_v28  ;;  %1059 = vmatpush.msra.mxu3 %v1058_v48 }
  0x87   :  { %v1082_v40 = vand.u32 4294901760, %v1081_v10 }
  0x88   :  { %978 = vmatpush.msra.mxu2 %v3430_v63  ;;  %v1064_v45 = vand.u32 4294901760, %v1063_v30 }
  0x8a   :  { %1065 = vmatpush.msra.mxu3 %v1064_v45 }
  0x8c   :  { %1071 = vmatpush.msra.mxu3 %v1070_v47 }
  0x8e   :  { %1077 = vmatpush.msra.mxu3 %v1076_v61  ;;  %v118_v61 = vperm.slane %v113_v49, 1  ;;  %v4695_v49 = vand.u32 4294901760, %v3230_v52 }
  0x90   :  { %1083 = vmatpush.msra.mxu3 %v1082_v40 }
  0x9f   :  { %v155_v5 = vpop.f32.mrf.mxu0 }
  0xa0   :  { %v156_v1 = vadd.f32 %v155_v5, %v117_v24 }
  0xa3   :  { %v216_v54 = vpop.f32.mrf.mxu1  ;;  %v254_v18 = vpop.f32.mrf.mxu2 }
  0xa4   :  { %v217_v11 = vadd.f32 %v216_v54, %v156_v1 }
  0xa6   :  { %v255_v62 = vadd.f32 %v254_v18, %v217_v11 }
  0xa7   :  { %v285_v46 = vpop.f32.mrf.mxu3 }
  0xa8   :  { %v286_v48 = vadd.f32 %v285_v46, %v255_v62 }
  0xaa   :  { %v330_v30 = vpop.f32.mrf.mxu0 }
  0xab   :  { %v331_v31 = vadd.f32 %v330_v30, %v286_v48  ;;  %v69_v30 = vld [vmem:[#allocation2 + $0x128] sm:$0xff] }
  0xad   :  { %v359_v45 = vpop.f32.mrf.mxu1 }
  0xae   :  { %v360_v37 = vadd.f32 %v359_v45, %v331_v31 }
  0xb0   :  { %v599_v32 = vmax.f32 %v360_v37, 0.0 }
  0xb2   :  { %v3453_v25 = vand.u32 4294901760, %v599_v32 }
  0xb4   :  { %v3456_v47 = vsub.f32 %v599_v32, %v3453_v25  ;;  %744 = vmatmul.f32.vlgmr.msrb.gmra.mxu1 %v3453_v25 }
  0xb5   :  { %1144 = vmatpush.msrb.mxu1 %v3196_v13 }
  0xb6   :  { %798 = vmatmul.f32.vlgmr.msrb.gmra.mxu2 %v3456_v47  ;;  %v3462_v10 = vand.u32 4294901760, %v3456_v47 }
  0xb7   :  { %v392_v40 = vpop.f32.mrf.mxu2  ;;  %1146 = vmatpush.msrb.mxu1 %v3208_v60  ;;  %1185 = vmatpush.msrb.mxu2 %v990_v14  ;;  %v4696_v14 = vand.u32 4294901760, %v3242_v7 }
  0xb8   :  { %v393_v24 = vadd.f32 %v392_v40, %v118_v61  ;;  %837 = vmatmul.f32.vlgmr.msrb.gmra.mxu3 %v3462_v10  ;;  %v641_v32 = vsub.f32 %v3456_v47, %v3462_v10 }
  0xb9   :  { %1148 = vmatpush.msrb.mxu1 %v3220_v27  ;;  %1189 = vmatpush.msrb.mxu2 %v4695_v49 }
  0xba   :  { %v453_v5 = vpop.f32.mrf.mxu3  ;;  %1252 = vmatpush.msrb.mxu3 %v3196_v13  ;;  %v3474_v1 = vand.u32 4294901760, %v641_v32 }
  0xbb   :  { %v454_v54 = vadd.f32 %v453_v5, %v393_v24  ;;  %1150 = vmatpush.msrb.mxu1 %v3232_v36  ;;  %1193 = vmatpush.msrb.mxu2 %v4696_v14  ;;  %v63_v24 = vld [vmem:[#allocation2 + $0xf8] sm:$0xff] }
  0xbc   :  { %v491_v18 = vpop.f32.mrf.mxu0  ;;  %1254 = vmatpush.msrb.mxu3 %v3208_v60  ;;  %643 = vmatmul.f32.vlgmr.msrb.gmra.mxu0 %v3474_v1  ;;  %v79_v60 = vld [vmem:[#allocation2 + $0x178] sm:$0xff] }
  0xbd   :  { %v492_v11 = vadd.f32 %v491_v18, %v454_v54  ;;  %943 = vmatmul.f32.vlgmr.msra.gmra.mxu1 %v3453_v25  ;;  %1091 = vmatpush.msrb.mxu0 %v3218_v20  ;;  %v3605_v54 = vand.u32 4294901760, %v63_v24 }
  0xbe   :  { %v522_v62 = vpop.f32.mrf.mxu1  ;;  %1152 = vmatpush.msrb.mxu1 %v3244_v33  ;;  %1197 = vmatpush.msrb.mxu2 %v1008_v55 }
  0xbf   :  { %v523_v13 = vadd.f32 %v522_v62, %v492_v11  ;;  %1256 = vmatpush.msrb.mxu3 %v3220_v27  ;;  %1094 = vmatpush.msrb.mxu0 %v3230_v52  ;;  %v3498_v27 = vand.u32 4294901760, %v79_v60  ;;  %v77_v52 = vld [vmem:[#allocation2 + $0x168] sm:$0xff]  ;;  %v59_v11 = vld [vmem:[#allocation2 + $0xd8] sm:$0xff] }
  0xc0   :  { %v567_v46 = vpop.f32.mrf.mxu2  ;;  %1154 = vmatpush.msrb.mxu1 %v3303_v26  ;;  %1201 = vmatpush.msrb.mxu2 %v1014_v4  ;;  %v73_v4 = vld [vmem:[#allocation2 + $0x148] sm:$0xff] }
  0xc1   :  { %v568_v48 = vadd.f32 %v567_v46, %v523_v13  ;;  %1258 = vmatpush.msrb.mxu3 %v3232_v36  ;;  %1097 = vmatpush.msrb.mxu0 %v3242_v7  ;;  %v75_v7 = vld [vmem:[#allocation2 + $0x158] sm:$0xff] }
  0xc2   :  { %1156 = vmatpush.msrb.mxu1 %v3339_v34  ;;  %1205 = vmatpush.msrb.mxu2 %v1020_v50  ;;  %v71_v50 = vld [vmem:[#allocation2 + $0x138] sm:$0xff] }
  0xc3   :  { %v596_v20 = vpop.f32.mrf.mxu3  ;;  %1260 = vmatpush.msrb.mxu3 %v3244_v33  ;;  %1100 = vmatpush.msrb.mxu0 %v3254_v59  ;;  %v3507_v59 = vand.u32 4294901760, %v77_v52  ;;  %v3513_v33 = vsub.f32 %v79_v60, %v3498_v27 }
  0xc4   :  { %v597_v55 = vadd.f32 %v596_v20, %v568_v48  ;;  %1158 = vmatpush.msrb.mxu1 %v3349_v51  ;;  %1209 = vmatpush.msrb.mxu2 %v1026_v2  ;;  %v57_v48 = vld [vmem:[#allocation2 + $0xc8] sm:$0xff]  ;;  %v3632_v20 = vand.u32 4294901760, %v59_v11 }
  0xc5   :  { %1262 = vmatpush.msrb.mxu3 %v3303_v26  ;;  %906 = vmatmul.f32.vlgmr.msra.gmra.mxu0 %v3453_v25  ;;  %v3530_v2 = vsub.f32 %v77_v52, %v3507_v59 }
  0xc6   :  { %v600_v36 = vmax.f32 %v597_v55, 0.0  ;;  %1103 = vmatpush.msrb.mxu0 %v3264_v38  ;;  %1160 = vmatpush.msrb.mxu1 %v3361_v6  ;;  %v3519_v38 = vand.u32 4294901760, %v75_v7 }
  0xc7   :  { %1213 = vmatpush.msrb.mxu2 %v1032_v41  ;;  %1264 = vmatpush.msrb.mxu3 %v3339_v34 }
  0xc8   :  { %v3515_v26 = vand.u32 4294901760, %v600_v36  ;;  %1106 = vmatpush.msrb.mxu0 %v3342_v35  ;;  %1162 = vmatpush.msrb.mxu1 %v3373_v43  ;;  %v3532_v35 = vand.u32 4294901760, %v73_v4 }
  0xc9   :  { %1217 = vmatpush.msrb.mxu2 %v1038_v15  ;;  %1266 = vmatpush.msrb.mxu3 %v3349_v51  ;;  %v4679_v51 = vand.u32 4294901760, %v3513_v33  ;;  %v3546_v15 = vand.u32 4294901760, %v71_v50 }
  0xca   :  { %v3525_v34 = vsub.f32 %v600_v36, %v3515_v26  ;;  %1109 = vmatpush.msrb.mxu0 %v3352_v57  ;;  %1164 = vmatpush.msrb.mxu1 %v3382_v23  ;;  %v3544_v57 = vsub.f32 %v75_v7, %v3519_v38  ;;  %v3557_v31 = vsub.f32 %v73_v4, %v3532_v35  ;;  %v55_v7 = vld [vmem:[#allocation2 + $0xb8] sm:$0xff]  ;;  %v3644_v4 = vand.u32 4294901760, %v57_v48 }
  0xcb   :  { %1221 = vmatpush.msrb.mxu2 %v1044_v3  ;;  %1268 = vmatpush.msrb.mxu3 %v3361_v6  ;;  %v67_v6 = vld [vmem:[#allocation2 + $0x118] sm:$0xff]  ;;  %v4678_v3 = vand.u32 4294901760, %v3530_v2  ;;  %v3573_v61 = vsub.f32 %v71_v50, %v3546_v15 }
  0xcc   :  { %4697 = vst [vmem:[#allocation8_spill] sm:$0xff] %v3525_v34  ;;  %v3539_v41 = vand.u32 4294901760, %v3525_v34  ;;  %1112 = vmatpush.msrb.mxu0 %v3364_v8  ;;  %1166 = vmatpush.msrb.mxu1 %v3390_v19  ;;  %v4676_v37 = vand.u32 4294901760, %v3544_v57 }
  0xcd   :  { %1225 = vmatpush.msrb.mxu2 %v1050_v12  ;;  %1270 = vmatpush.msrb.mxu3 %v3373_v43  ;;  %v1332_v43 = vsub.f32 %v3513_v33, %v4679_v51  ;;  %v65_v12 = vld [vmem:[#allocation2 + $0x108] sm:$0xff]  ;;  %v4674_v49 = vand.u32 4294901760, %v3573_v61 }
  0xce   :  { %4698 = vst [vmem:[#allocation9_spill] sm:$0xff] %v3539_v41  ;;  %1115 = vmatpush.msrb.mxu0 %v3376_v42  ;;  %1168 = vmatpush.msrb.mxu1 %v3403_v22  ;;  %v982_v8 = vsub.f32 %v3525_v34, %v3539_v41  ;;  %v3565_v42 = vand.u32 4294901760, %v69_v30  ;;  %v3586_v40 = vand.u32 4294901760, %v65_v12  ;;  %v1344_v32 = vsub.f32 %v3544_v57, %v4676_v37 }
  0xcf   :  { %1229 = vmatpush.msrb.mxu2 %v1056_v16  ;;  %1272 = vmatpush.msrb.mxu3 %v3382_v23  ;;  %v3575_v16 = vand.u32 4294901760, %v67_v6  ;;  %v1338_v23 = vsub.f32 %v3530_v2, %v4678_v3  ;;  %v1356_v46 = vsub.f32 %v3573_v61, %v4674_v49  ;;  %v97_v49 = vld [vmem:[#allocation2 + $0x208] sm:$0xff] }
  0xd0   :  { %1118 = vmatpush.msrb.mxu0 %v3385_v56  ;;  %1170 = vmatpush.msrb.mxu1 %v3413_v53  ;;  %v3569_v45 = vand.u32 4294901760, %v982_v8  ;;  %v4675_v56 = vand.u32 4294901760, %v3557_v31  ;;  %v3614_v18 = vsub.f32 %v65_v12, %v3586_v40  ;;  %v1345_v13 = vand.u32 4294901760, %v1344_v32  ;;  %v51_v12 = vld [vmem:[#allocation2 + $0x98] sm:$0xff] }
  0xd1   :  { %1233 = vmatpush.msrb.mxu2 %v1062_v28  ;;  %1274 = vmatpush.msrb.mxu3 %v3390_v19  ;;  %v3591_v28 = vsub.f32 %v69_v30, %v3565_v42  ;;  %v1333_v19 = vand.u32 4294901760, %v1332_v43  ;;  %v3601_v5 = vsub.f32 %v67_v6, %v3575_v16  ;;  %v3654_v6 = vsub.f32 %v59_v11, %v3632_v20 }
  0xd2   :  { %984 = vmatmul.f32.vlgmr.msra.gmra.mxu2 %v3569_v45  ;;  %1085 = vmatmul.f32.vlgmr.msra.gmra.mxu3 %v3515_v26  ;;  %v1350_v14 = vsub.f32 %v3557_v31, %v4675_v56  ;;  %v4671_v55 = vand.u32 4294901760, %v3614_v18  ;;  %v3656_v8 = vand.u32 4294901760, %v55_v7  ;;  %v3680_v11 = vand.u32 4294901760, %v51_v12  ;;  %v91_v56 = vld [vmem:[#allocation2 + $0x1d8] sm:$0xff] }
  0xd3   :  { %1121 = vmatpush.msrb.mxu0 %v3393_v9  ;;  %1172 = vmatpush.msrb.mxu1 %v3422_v17  ;;  %v61_v9 = vld [vmem:[#allocation2 + $0xe8] sm:$0xff]  ;;  %v4672_v60 = vand.u32 4294901760, %v3601_v5  ;;  %v3800_v3 = vand.u32 4294901760, %v97_v49 }
  0xd4   :  { %1237 = vmatpush.msrb.mxu2 %v1068_v58  ;;  %1276 = vmatpush.msrb.mxu3 %v3403_v22  ;;  %v4699_v58 = vand.u32 4294901760, %v3433_v0  ;;  %v1339_v22 = vand.u32 4294901760, %v1338_v23  ;;  %v3619_v62 = vand.u32 4294901760, %v61_v9  ;;  %v1351_v52 = vand.u32 4294901760, %v1350_v14 }
  0xd5   :  { %1124 = vmatpush.msrb.mxu0 %v3406_v44  ;;  %1174 = vmatpush.msrb.mxu1 %v3430_v63  ;;  %v4673_v44 = vand.u32 4294901760, %v3591_v28  ;;  %v1368_v50 = vsub.f32 %v3601_v5, %v4672_v60  ;;  %v1374_v43 = vsub.f32 %v3614_v18, %v4671_v55  ;;  %v3678_v14 = vsub.f32 %v55_v7, %v3656_v8 }
  0xd6   :  { %1241 = vmatpush.msrb.mxu2 %v4699_v58  ;;  %1278 = vmatpush.msrb.mxu3 %v3413_v53  ;;  %v4700_v53 = vand.u32 4294901760, %v3444_v39  ;;  %v3642_v36 = vsub.f32 %v61_v9, %v3619_v62  ;;  %v49_v9 = vld [vmem:[#allocation2 + $0x88] sm:$0xff] }
  0xd7   :  { %1178 = vmatmul.f32.vlgmr.msrb.gmra.mxu1 %v3539_v41  ;;  %1127 = vmatpush.msrb.mxu0 %v3416_v29  ;;  %v3630_v29 = vsub.f32 %v63_v24, %v3605_v54 }
  0xd8   :  { %1334 = vmatpush.msra.mxu1 %v1333_v19  ;;  %1245 = vmatpush.msrb.mxu2 %v4700_v53  ;;  %v4667_v24 = vand.u32 4294901760, %v3642_v36  ;;  %v3666_v19 = vsub.f32 %v57_v48, %v3644_v4  ;;  %v3692_v48 = vand.u32 4294901760, %v49_v9 }
  0xd9   :  { %1280 = vmatpush.msrb.mxu3 %v3422_v17  ;;  %1130 = vmatpush.msrb.mxu0 %v3425_v21  ;;  %v1362_v17 = vsub.f32 %v3591_v28, %v4673_v44  ;;  %v1357_v21 = vand.u32 4294901760, %v1356_v46  ;;  %v4669_v30 = vand.u32 4294901760, %v3630_v29  ;;  %v99_v44 = vld [vmem:[#allocation2 + $0x218] sm:$0xff] }
  0xda   :  { %1432 = vmatpush.msra.mxu2 %v3513_v33  ;;  %1340 = vmatpush.msra.mxu1 %v1339_v22  ;;  %v4665_v22 = vand.u32 4294901760, %v3654_v6  ;;  %v1386_v53 = vsub.f32 %v3642_v36, %v4667_v24  ;;  %v105_v24 = vld [vmem:[#allocation2 + $0x248] sm:$0xff]  ;;  %v3787_v37 = vand.u32 4294901760, %v99_v44 }
  0xdb   :  { %1282 = vmatpush.msrb.mxu3 %v3430_v63  ;;  %1247 = vmatmul.f32.vlgmr.msrb.gmra.mxu2 %v3515_v26  ;;  %v53_v63 = vld [vmem:[#allocation2 + $0xa8] sm:$0xff]  ;;  %v1363_v23 = vand.u32 4294901760, %v1362_v17  ;;  %v1380_v58 = vsub.f32 %v3630_v29, %v4669_v30  ;;  %v4664_v17 = vand.u32 4294901760, %v3678_v14  ;;  %v103_v30 = vld [vmem:[#allocation2 + $0x238] sm:$0xff] }
  0xdc   :  { %1284 = vmatmul.f32.vlgmr.msrb.gmra.mxu3 %v3515_v26  ;;  %1346 = vmatpush.msra.mxu1 %v1345_v13  ;;  %v3668_v32 = vand.u32 4294901760, %v53_v63  ;;  %v4663_v13 = vand.u32 4294901760, %v3666_v19  ;;  %v1392_v7 = vsub.f32 %v3654_v6, %v4665_v22  ;;  %v107_v22 = vld [vmem:[#allocation2 + $0x258] sm:$0xff] }
  0xdd   :  { %1435 = vmatpush.msra.mxu2 %v3530_v2  ;;  %1485 = vmatpush.msra.mxu3 %v3498_v27 }
  0xde   :  { %1133 = vmatpush.msrb.mxu0 %v3433_v0  ;;  %1352 = vmatpush.msra.mxu1 %v1351_v52  ;;  %v1369_v0 = vand.u32 4294901760, %v1368_v50  ;;  %v3690_v46 = vsub.f32 %v53_v63, %v3668_v32  ;;  %v1381_v52 = vand.u32 4294901760, %v1380_v58  ;;  %v1387_v50 = vand.u32 4294901760, %v1386_v53 }
  0xdf   :  { %1438 = vmatpush.msra.mxu2 %v3544_v57  ;;  %1487 = vmatpush.msra.mxu3 %v3507_v59  ;;  %v1398_v63 = vsub.f32 %v3666_v19, %v4663_v13  ;;  %v1404_v58 = vsub.f32 %v3678_v14, %v4664_v17 }
  0xe0   :  { %1136 = vmatpush.msrb.mxu0 %v3444_v39  ;;  %1358 = vmatpush.msra.mxu1 %v1357_v21  ;;  %v1375_v39 = vand.u32 4294901760, %v1374_v43  ;;  %v3702_v21 = vsub.f32 %v51_v12, %v3680_v11  ;;  %v4666_v43 = vand.u32 4294901760, %v3690_v46  ;;  %v111_v12 = vld [vmem:[#allocation2 + $0x278] sm:$0xff] }
  0xe1   :  { %1139 = vmatmul.f32.vlgmr.msrb.gmra.mxu0 %v3525_v34  ;;  %1441 = vmatpush.msra.mxu2 %v3557_v31  ;;  %v1399_v53 = vand.u32 4294901760, %v1398_v63  ;;  %v3728_v13 = vand.u32 4294901760, %v111_v12  ;;  %v1405_v17 = vand.u32 4294901760, %v1404_v58 }
  0xe2   :  { %1289 = vmatpush.msra.mxu0 %v3498_v27  ;;  %1489 = vmatpush.msra.mxu3 %v3519_v38 }
  0xe3   :  { %1364 = vmatpush.msra.mxu1 %v1363_v23  ;;  %1444 = vmatpush.msra.mxu2 %v3573_v61  ;;  %v3712_v23 = vsub.f32 %v49_v9, %v3692_v48  ;;  %v109_v9 = vld [vmem:[#allocation2 + $0x268] sm:$0xff]  ;;  %v3745_v58 = vsub.f32 %v111_v12, %v3728_v13  ;;  %v3757_v12 = vand.u32 4294901760, %v105_v24 }
  0xe4   :  { %1291 = vmatpush.msra.mxu0 %v3507_v59  ;;  %1491 = vmatpush.msra.mxu3 %v3532_v35  ;;  %v3736_v63 = vand.u32 4294901760, %v109_v9 }
  0xe5   :  { %1370 = vmatpush.msra.mxu1 %v1369_v0  ;;  %1447 = vmatpush.msra.mxu2 %v3591_v28  ;;  %4701 = vst [vmem:[#allocation10_spill] sm:$0xff] %v3712_v23  ;;  %v1393_v0 = vand.u32 4294901760, %v1392_v7  ;;  %v4670_v7 = vand.u32 4294901760, %v3712_v23  ;;  %v4677_v60 = vand.u32 4294901760, %v3745_v58 }
  0xe6   :  { %1293 = vmatpush.msra.mxu0 %v3519_v38  ;;  %1493 = vmatpush.msra.mxu3 %v3546_v15 }
  0xe7   :  { %1376 = vmatpush.msra.mxu1 %v1375_v39  ;;  %1450 = vmatpush.msra.mxu2 %v3601_v5  ;;  %v4668_v39 = vand.u32 4294901760, %v3702_v21 }
  0xe8   :  { %1295 = vmatpush.msra.mxu0 %v3532_v35  ;;  %1495 = vmatpush.msra.mxu3 %v3565_v42 }
  0xe9   :  { %1382 = vmatpush.msra.mxu1 %v1381_v52  ;;  %1453 = vmatpush.msra.mxu2 %v3614_v18  ;;  %v1410_v52 = vsub.f32 %v3690_v46, %v4666_v43 }
  0xea   :  { %1297 = vmatpush.msra.mxu0 %v3546_v15  ;;  %1497 = vmatpush.msra.mxu3 %v3575_v16 }
  0xeb   :  { %1388 = vmatpush.msra.mxu1 %v1387_v50  ;;  %1456 = vmatpush.msra.mxu2 %v3630_v29  ;;  %v1416_v50 = vsub.f32 %v3702_v21, %v4668_v39  ;;  %v1411_v43 = vand.u32 4294901760, %v1410_v52  ;;  %v3749_v39 = vand.u32 4294901760, %v107_v22  ;;  %v3753_v52 = vsub.f32 %v109_v9, %v3736_v63 }
  0xec   :  { %1299 = vmatpush.msra.mxu0 %v3565_v42  ;;  %1499 = vmatpush.msra.mxu3 %v3586_v40 }
  0xed   :  { %1394 = vmatpush.msra.mxu1 %v1393_v0  ;;  %1459 = vmatpush.msra.mxu2 %v3642_v36  ;;  %v1422_v0 = vsub.f32 %v3712_v23, %v4670_v7  ;;  %v101_v7 = vld [vmem:[#allocation2 + $0x228] sm:$0xff]  ;;  %v3766_v9 = vsub.f32 %v107_v22, %v3749_v39  ;;  %v1673_v22 = vsub.f32 %v3745_v58, %v4677_v60 }
  0xee   :  { %1301 = vmatpush.msra.mxu0 %v3575_v16  ;;  %1501 = vmatpush.msra.mxu3 %v3605_v54  ;;  %v3811_v60 = vsub.f32 %v99_v44, %v3787_v37  ;;  %v3824_v44 = vsub.f32 %v97_v49, %v3800_v3 }
  0xef   :  { %1400 = vmatpush.msra.mxu1 %v1399_v53  ;;  %1462 = vmatpush.msra.mxu2 %v3654_v6  ;;  %v1417_v53 = vand.u32 4294901760, %v1416_v50  ;;  %v1423_v55 = vand.u32 4294901760, %v1422_v0  ;;  %v4680_v50 = vand.u32 4294901760, %v3753_v52  ;;  %v3775_v0 = vsub.f32 %v105_v24, %v3757_v12  ;;  %v95_v24 = vld [vmem:[#allocation2 + $0x1f8] sm:$0xff] }
  0xf0   :  { %1303 = vmatpush.msra.mxu0 %v3586_v40  ;;  %1503 = vmatpush.msra.mxu3 %v3619_v62  ;;  %v1674_v51 = vand.u32 4294901760, %v1673_v22  ;;  %v3813_v34 = vand.u32 4294901760, %v95_v24 }
  0xf1   :  { %1406 = vmatpush.msra.mxu1 %v1405_v17  ;;  %1465 = vmatpush.msra.mxu2 %v3666_v19  ;;  %v3761_v17 = vand.u32 4294901760, %v103_v30  ;;  %4702 = vst [vmem:[#allocation11_spill] sm:$0xff] %v3775_v0 }
  0xf2   :  { %1305 = vmatpush.msra.mxu0 %v3605_v54  ;;  %1505 = vmatpush.msra.mxu3 %v3632_v20  ;;  %v3836_v49 = vsub.f32 %v95_v24, %v3813_v34 }
  0xf3   :  { %1412 = vmatpush.msra.mxu1 %v1411_v43  ;;  %1468 = vmatpush.msra.mxu2 %v3678_v14  ;;  %v3770_v43 = vand.u32 4294901760, %v101_v7 }
  0xf4   :  { %1307 = vmatpush.msra.mxu0 %v3619_v62  ;;  %1507 = vmatpush.msra.mxu3 %v3644_v4 }
  0xf5   :  { %1418 = vmatpush.msra.mxu1 %v1417_v53  ;;  %1471 = vmatpush.msra.mxu2 %v3690_v46  ;;  %v3782_v53 = vsub.f32 %v103_v30, %v3761_v17  ;;  %v3795_v30 = vsub.f32 %v101_v7, %v3770_v43 }
  0xf6   :  { %1309 = vmatpush.msra.mxu0 %v3632_v20  ;;  %1509 = vmatpush.msra.mxu3 %v3656_v8 }
  0xf7   :  { %1424 = vmatpush.msra.mxu1 %v1423_v55  ;;  %1474 = vmatpush.msra.mxu2 %v3702_v21  ;;  %4703 = vst [vmem:[#allocation12_spill] sm:$0xff] %v3782_v53  ;;  %v1679_v55 = vsub.f32 %v3753_v52, %v4680_v50  ;;  %v93_v50 = vld [vmem:[#allocation2 + $0x1e8] sm:$0xff] }
  0xf8   :  { %1311 = vmatpush.msra.mxu0 %v3644_v4  ;;  %1511 = vmatpush.msra.mxu3 %v3668_v32  ;;  %4704 = vst [vmem:[#allocation13_spill] sm:$0xff] %v3795_v30  ;;  %v3826_v41 = vand.u32 4294901760, %v93_v50 }
  0xf9   :  { %1426 = vmatmul.f32.vlgmr.msra.gmra.mxu1 %v3453_v25  ;;  %1477 = vmatpush.msra.mxu2 %v3712_v23  ;;  %v89_v23 = vld [vmem:[#allocation2 + $0x1c8] sm:$0xff] }
  0xfa   :  { %1593 = vmatpush.msrb.mxu1 %v3498_v27  ;;  %1313 = vmatpush.msra.mxu0 %v3656_v8  ;;  %v4705_v27 = vand.u32 4294901760, %v3766_v9  ;;  %v3848_v24 = vsub.f32 %v93_v50, %v3826_v41 }
  0xfb   :  { %1513 = vmatpush.msra.mxu3 %v3680_v11  ;;  %1480 = vmatmul.f32.vlgmr.msra.gmra.mxu2 %v3456_v47  ;;  %v1680_v47 = vand.u32 4294901760, %v1679_v55  ;;  %v4707_v55 = vand.u32 4294901760, %v3782_v53 }
  0xfc   :  { %1595 = vmatpush.msrb.mxu1 %v3507_v59  ;;  %1630 = vmatpush.msrb.mxu2 %v3728_v13  ;;  %v1685_v7 = vsub.f32 %v3766_v9, %v4705_v27  ;;  %v4706_v59 = vand.u32 4294901760, %v3775_v0 }
  0xfd   :  { %1315 = vmatpush.msra.mxu0 %v3668_v32  ;;  %1515 = vmatpush.msra.mxu3 %v3692_v48  ;;  %v1697_v22 = vsub.f32 %v3782_v53, %v4707_v55  ;;  %v87_v53 = vld [vmem:[#allocation2 + $0x1b8] sm:$0xff] }
  0xfe   :  { %1519 = vmatmul.f32.vlgmr.msra.gmra.mxu3 %v3462_v10  ;;  %1597 = vmatpush.msrb.mxu1 %v3519_v38  ;;  %v1691_v27 = vsub.f32 %v3775_v0, %v4706_v59  ;;  %v1686_v10 = vand.u32 4294901760, %v1685_v7  ;;  %v3838_v59 = vand.u32 4294901760, %v91_v56  ;;  %v3850_v38 = vand.u32 4294901760, %v89_v23  ;;  %v85_v0 = vld [vmem:[#allocation2 + $0x1a8] sm:$0xff]  ;;  %v83_v7 = vld [vmem:[#allocation2 + $0x198] sm:$0xff] }
  0xff   :  { %1632 = vmatpush.msrb.mxu2 %v3736_v63  ;;  %1675 = vmatpush.msrb.mxu3 %v1674_v51  ;;  %v4708_v51 = vand.u32 4294901760, %v3795_v30 }
 0x100   :  { %1317 = vmatpush.msra.mxu0 %v3680_v11  ;;  %1599 = vmatpush.msrb.mxu1 %v3532_v35  ;;  %v1692_v35 = vand.u32 4294901760, %v1691_v27  ;;  %v3861_v50 = vsub.f32 %v91_v56, %v3838_v59  ;;  %v3874_v56 = vsub.f32 %v89_v23, %v3850_v38 }
 0x101   :  { %1634 = vmatpush.msrb.mxu2 %v3749_v39  ;;  %1681 = vmatpush.msrb.mxu3 %v1680_v47  ;;  %v1703_v55 = vsub.f32 %v3795_v30, %v4708_v51  ;;  %v1698_v47 = vand.u32 4294901760, %v1697_v22  ;;  %v4709_v51 = vand.u32 4294901760, %v3513_v33  ;;  %v3863_v30 = vand.u32 4294901760, %v87_v53 }
 0x102   :  { %1319 = vmatpush.msra.mxu0 %v3692_v48  ;;  %1601 = vmatpush.msrb.mxu1 %v3546_v15  ;;  %v4710_v15 = vand.u32 4294901760, %v3811_v60  ;;  %v4711_v33 = vand.u32 4294901760, %v3530_v2  ;;  %v4712_v22 = vand.u32 4294901760, %v3824_v44  ;;  %v4713_v2 = vand.u32 4294901760, %v3544_v57 }
 0x103   :  { %1325 = vmatmul.f32.vlgmr.msra.gmra.mxu0 %v3474_v1  ;;  %1636 = vmatpush.msrb.mxu2 %v3757_v12  ;;  %v1704_v1 = vand.u32 4294901760, %v1703_v55  ;;  %v4714_v55 = vand.u32 4294901760, %v3836_v49  ;;  %v3887_v23 = vsub.f32 %v87_v53, %v3863_v30  ;;  %v4715_v57 = vand.u32 4294901760, %v3557_v31 }
 0x104   :  { %1526 = vmatpush.msrb.mxu0 %v4709_v51  ;;  %1687 = vmatpush.msrb.mxu3 %v1686_v10  ;;  %v1709_v27 = vsub.f32 %v3811_v60, %v4710_v15  ;;  %v1715_v10 = vsub.f32 %v3824_v44, %v4712_v22  ;;  %v1726_v51 = vand.u32 4294901760, %v3848_v24  ;;  %v3876_v15 = vand.u32 4294901760, %v85_v0  ;;  %v81_v22 = vld [vmem:[#allocation2 + $0x188] sm:$0xff] }
 0x105   :  { %1603 = vmatpush.msrb.mxu1 %v3565_v42  ;;  %1638 = vmatpush.msrb.mxu2 %v3761_v17  ;;  %v4716_v31 = vand.u32 4294901760, %v3573_v61 }
 0x106   :  { %1530 = vmatpush.msrb.mxu0 %v4711_v33  ;;  %1693 = vmatpush.msrb.mxu3 %v1692_v35  ;;  %v1710_v42 = vand.u32 4294901760, %v1709_v27  ;;  %v1721_v35 = vsub.f32 %v3836_v49, %v4714_v55  ;;  %v1732_v33 = vand.u32 4294901760, %v3861_v50  ;;  %v1727_v27 = vsub.f32 %v3848_v24, %v1726_v51 }
 0x107   :  { %1605 = vmatpush.msrb.mxu1 %v3575_v16  ;;  %1640 = vmatpush.msrb.mxu2 %v3770_v43  ;;  %v3891_v16 = vand.u32 4294901760, %v83_v7  ;;  %v3900_v53 = vsub.f32 %v85_v0, %v3876_v15  ;;  %v1744_v55 = vand.u32 4294901760, %v3887_v23  ;;  %v4717_v0 = vand.u32 4294901760, %v3591_v28 }
 0x108   :  { %1534 = vmatpush.msrb.mxu0 %v4713_v2  ;;  %1699 = vmatpush.msrb.mxu3 %v1698_v47  ;;  %v1716_v47 = vand.u32 4294901760, %v1715_v10  ;;  %v1738_v2 = vand.u32 4294901760, %v3874_v56  ;;  %v1733_v10 = vsub.f32 %v3861_v50, %v1732_v33  ;;  %v1728_v61 = vand.u32 4294901760, %v1727_v27 }
 0x109   :  { %1607 = vmatpush.msrb.mxu1 %v3586_v40  ;;  %1642 = vmatpush.msrb.mxu2 %v3787_v37  ;;  %v3904_v40 = vand.u32 4294901760, %v81_v22 }
 0x10a   :  { %1538 = vmatpush.msrb.mxu0 %v4715_v57  ;;  %1705 = vmatpush.msrb.mxu3 %v1704_v1  ;;  %v1722_v1 = vand.u32 4294901760, %v1721_v35  ;;  %v1750_v35 = vand.u32 4294901760, %v3900_v53  ;;  %v1734_v28 = vand.u32 4294901760, %v1733_v10  ;;  %v1745_v57 = vsub.f32 %v3887_v23, %v1744_v55 }
 0x10b   :  { %1609 = vmatpush.msrb.mxu1 %v3605_v54  ;;  %1644 = vmatpush.msrb.mxu2 %v3800_v3  ;;  %v3915_v54 = vsub.f32 %v83_v7, %v3891_v16  ;;  %v4718_v7 = vand.u32 4294901760, %v3601_v5  ;;  %v4723_v10 = vand.u32 4294901760, %v3666_v19  ;;  %v4726_v19 = vand.u32 4294901760, %v3690_v46  ;;  %v4730_v46 = vld [vmem:[#allocation10_spill] sm:$0xff] }
 0x10c   :  { %1542 = vmatpush.msrb.mxu0 %v4716_v31  ;;  %1711 = vmatpush.msrb.mxu3 %v1710_v42  ;;  %v1739_v42 = vsub.f32 %v3874_v56, %v1738_v2  ;;  %v1751_v5 = vsub.f32 %v3900_v53, %v1750_v35  ;;  %v1746_v31 = vand.u32 4294901760, %v1745_v57 }
 0x10d   :  { %1611 = vmatpush.msrb.mxu1 %v3619_v62  ;;  %1646 = vmatpush.msrb.mxu2 %v3813_v34  ;;  %v3926_v62 = vsub.f32 %v81_v22, %v3904_v40 }
 0x10e   :  { %1546 = vmatpush.msrb.mxu0 %v4717_v0  ;;  %1717 = vmatpush.msrb.mxu3 %v1716_v47  ;;  %v4719_v47 = vand.u32 4294901760, %v3614_v18  ;;  %v1740_v22 = vand.u32 4294901760, %v1739_v42  ;;  %v4727_v0 = vand.u32 4294901760, %v3753_v52  ;;  %v4732_v42 = vld [vmem:[#allocation11_spill] sm:$0xff] }
 0x10f   :  { %1613 = vmatpush.msrb.mxu1 %v3632_v20  ;;  %1648 = vmatpush.msrb.mxu2 %v3826_v41  ;;  %v1756_v20 = vand.u32 4294901760, %v3915_v54  ;;  %v1762_v27 = vand.u32 4294901760, %v3926_v62 }
 0x110   :  { %1550 = vmatpush.msrb.mxu0 %v4718_v7  ;;  %1723 = vmatpush.msrb.mxu3 %v1722_v1  ;;  %v4721_v1 = vand.u32 4294901760, %v3642_v36  ;;  %v4733_v7 = vand.u32 4294901760, %v4732_v42 }
 0x111   :  { %1615 = vmatpush.msrb.mxu1 %v3644_v4  ;;  %1650 = vmatpush.msrb.mxu2 %v3838_v59  ;;  %v4720_v4 = vand.u32 4294901760, %v3630_v29  ;;  %v1757_v18 = vsub.f32 %v3915_v54, %v1756_v20  ;;  %v1763_v29 = vsub.f32 %v3926_v62, %v1762_v27 }
 0x112   :  { %1554 = vmatpush.msrb.mxu0 %v4719_v47  ;;  %1729 = vmatpush.msrb.mxu3 %v1728_v61  ;;  %v4731_v61 = vand.u32 4294901760, %v4730_v46 }
 0x113   :  { %1617 = vmatpush.msrb.mxu1 %v3656_v8  ;;  %1652 = vmatpush.msrb.mxu2 %v3850_v38  ;;  %v1752_v8 = vand.u32 4294901760, %v1751_v5  ;;  %v1758_v36 = vand.u32 4294901760, %v1757_v18  ;;  %v1984_v5 = vld [vmem:[%s4652_s2 + $0x58] sm:$0xff] }
 0x114   :  { %1558 = vmatpush.msrb.mxu0 %v4720_v4  ;;  %1735 = vmatpush.msrb.mxu3 %v1734_v28 }
 0x115   :  { %1619 = vmatpush.msrb.mxu1 %v3668_v32  ;;  %1654 = vmatpush.msrb.mxu2 %v3863_v30  ;;  %v4722_v32 = vand.u32 4294901760, %v3654_v6  ;;  %v4724_v6 = vand.u32 4294901760, %v3678_v14  ;;  %v4729_v14 = vand.u32 4294901760, %v3766_v9 }
 0x116   :  { %1562 = vmatpush.msrb.mxu0 %v4721_v1  ;;  %1741 = vmatpush.msrb.mxu3 %v1740_v22  ;;  %v4060_v1 = vand.u32 4294901760, %v1984_v5 }
 0x117   :  { %1621 = vmatpush.msrb.mxu1 %v3680_v11  ;;  %1656 = vmatpush.msrb.mxu2 %v3876_v15  ;;  %v1764_v11 = vand.u32 4294901760, %v1763_v29  ;;  %v1981_v29 = vld [vmem:[%s4652_s2 + $0x40] sm:$0xff] }
 0x118   :  { %1566 = vmatpush.msrb.mxu0 %v4722_v32  ;;  %1747 = vmatpush.msrb.mxu3 %v1746_v31  ;;  %v1983_v31 = vld [vmem:[%s4652_s2 + $0x50] sm:$0xff]  ;;  %v4091_v32 = vsub.f32 %v1984_v5, %v4060_v1 }
 0x119   :  { %1623 = vmatpush.msrb.mxu1 %v3692_v48  ;;  %1658 = vmatpush.msrb.mxu2 %v3891_v16  ;;  %v4725_v48 = vand.u32 4294901760, %v3745_v58 }
 0x11a   :  { %1570 = vmatpush.msrb.mxu0 %v4723_v10  ;;  %1753 = vmatpush.msrb.mxu3 %v1752_v8  ;;  %v1982_v8 = vld [vmem:[%s4652_s2 + $0x48] sm:$0xff] }
 0x11b   :  { %1625 = vmatmul.f32.vlgmr.msrb.gmra.mxu1 %v3453_v25  ;;  %1660 = vmatpush.msrb.mxu2 %v3904_v40 }
 0x11c   :  { %1826 = vmatpush.msra.mxu1 %v3728_v13  ;;  %1574 = vmatpush.msrb.mxu0 %v4724_v6  ;;  %v2072_v6 = vand.u32 4294901760, %v4091_v32 }
 0x11d   :  { %1759 = vmatpush.msrb.mxu3 %v1758_v36  ;;  %1666 = vmatmul.f32.vlgmr.msrb.gmra.mxu2 %v3569_v45  ;;  %v4728_v45 = vand.u32 4294901760, %v3702_v21 }
 0x11e   :  { %1828 = vmatpush.msra.mxu1 %v3736_v63  ;;  %1867 = vmatpush.msra.mxu2 %v4725_v48 }
 0x11f   :  { %1578 = vmatpush.msrb.mxu0 %v4726_v19  ;;  %1765 = vmatpush.msrb.mxu3 %v1764_v11 }
 0x120   :  { %1767 = vmatmul.f32.vlgmr.msrb.gmra.mxu3 %v3515_v26  ;;  %1830 = vmatpush.msra.mxu1 %v3749_v39 }
 0x121   :  { %1871 = vmatpush.msra.mxu2 %v4727_v0  ;;  %1934 = vmatpush.msra.mxu3 %v3728_v13  ;;  %v4734_v13 = vld [vmem:[#allocation12_spill] sm:$0xff]  ;;  %v4141_v0 = vld [vmem:[#allocation2 + $0x281] ss:$8 sm:$0x3] }
 0x122   :  { %1582 = vmatpush.msrb.mxu0 %v4728_v45  ;;  %1832 = vmatpush.msra.mxu1 %v3757_v12  ;;  %v4735_v21 = vand.u32 4294901760, %v4734_v13 }
 0x123   :  { %1875 = vmatpush.msra.mxu2 %v4729_v14  ;;  %1936 = vmatpush.msra.mxu3 %v3736_v63  ;;  %v1988_v63 = vld [vmem:[%s4652_s2 + $0x78] sm:$0xff]  ;;  %v4741_v14 = vld [vmem:[#allocation9_spill] sm:$0xff] }
 0x124   :  { %1586 = vmatpush.msrb.mxu0 %v4731_v61  ;;  %1834 = vmatpush.msra.mxu1 %v3761_v17  ;;  %v2073_v61 = vsub.f32 %v4091_v32, %v2072_v6 }
 0x125   :  { %1588 = vmatmul.f32.vlgmr.msrb.gmra.mxu0 %v3453_v25  ;;  %1879 = vmatpush.msra.mxu2 %v4733_v7  ;;  %v4736_v25 = vld [vmem:[#allocation13_spill] sm:$0xff] }
 0x126   :  { %1773 = vmatpush.msra.mxu0 %v3745_v58  ;;  %1938 = vmatpush.msra.mxu3 %v3749_v39  ;;  %v4737_v28 = vand.u32 4294901760, %v4736_v25  ;;  %v1987_v39 = vld [vmem:[%s4652_s2 + $0x70] sm:$0xff]  ;;  %v4010_v58 = vand.u32 4294901760, %v1988_v63 }
 0x127   :  { %1836 = vmatpush.msra.mxu1 %v3770_v43  ;;  %1883 = vmatpush.msra.mxu2 %v4735_v21  ;;  %v4020_v57 = vand.u32 4294901760, %v1987_v39 }
 0x128   :  { %1776 = vmatpush.msra.mxu0 %v3753_v52  ;;  %1940 = vmatpush.msra.mxu3 %v3757_v12  ;;  %v4738_v52 = vand.u32 4294901760, %v3811_v60  ;;  %v1986_v12 = vld [vmem:[%s4652_s2 + $0x68] sm:$0xff]  ;;  %v4031_v47 = vsub.f32 %v1988_v63, %v4010_v58 }
 0x129   :  { %1838 = vmatpush.msra.mxu1 %v3787_v37  ;;  %1887 = vmatpush.msra.mxu2 %v4737_v28  ;;  %v4033_v22 = vand.u32 4294901760, %v1986_v12 }
 0x12a   :  { %1779 = vmatpush.msra.mxu0 %v3766_v9  ;;  %1942 = vmatpush.msra.mxu3 %v3761_v17  ;;  %v4739_v17 = vand.u32 4294901760, %v3824_v44  ;;  %v1985_v9 = vld [vmem:[%s4652_s2 + $0x60] sm:$0xff] }
 0x12b   :  { %1840 = vmatpush.msra.mxu1 %v3800_v3  ;;  %1891 = vmatpush.msra.mxu2 %v4738_v52  ;;  %v4046_v4 = vand.u32 4294901760, %v1985_v9  ;;  %v4058_v18 = vsub.f32 %v1986_v12, %v4033_v22  ;;  %v2074_v52 = vand.u32 4294901760, %v2073_v61 }
 0x12c   :  { %1782 = vmatpush.msra.mxu0 %v4732_v42  ;;  %1944 = vmatpush.msra.mxu3 %v3770_v43  ;;  %v4740_v43 = vand.u32 4294901760, %v3836_v49 }
 0x12d   :  { %1842 = vmatpush.msra.mxu1 %v3813_v34  ;;  %1895 = vmatpush.msra.mxu2 %v4739_v17 }
 0x12e   :  { %1785 = vmatpush.msra.mxu0 %v4734_v13  ;;  %1946 = vmatpush.msra.mxu3 %v3787_v37  ;;  %v4044_v37 = vsub.f32 %v1987_v39, %v4020_v57 }
 0x12f   :  { %1844 = vmatpush.msra.mxu1 %v3826_v41  ;;  %1899 = vmatpush.msra.mxu2 %v4740_v43 }
 0x130   :  { %1788 = vmatpush.msra.mxu0 %v4736_v25  ;;  %1948 = vmatpush.msra.mxu3 %v3800_v3  ;;  %v2048_v3 = vand.u32 4294901760, %v4031_v47 }
 0x131   :  { %1846 = vmatpush.msra.mxu1 %v3838_v59  ;;  %1903 = vmatpush.msra.mxu2 %v1726_v51  ;;  %v4074_v51 = vand.u32 4294901760, %v1983_v31 }
 0x132   :  { %1791 = vmatpush.msra.mxu0 %v3811_v60  ;;  %1950 = vmatpush.msra.mxu3 %v3813_v34  ;;  %v2054_v34 = vand.u32 4294901760, %v4044_v37  ;;  %v4072_v60 = vsub.f32 %v1985_v9, %v4046_v4 }
 0x133   :  { %1848 = vmatpush.msra.mxu1 %v3850_v38  ;;  %1907 = vmatpush.msra.mxu2 %v1732_v33  ;;  %v4082_v33 = vand.u32 4294901760, %v1982_v8  ;;  %v4108_v10 = vsub.f32 %v1983_v31, %v4074_v51 }
 0x134   :  { %1794 = vmatpush.msra.mxu0 %v3824_v44  ;;  %1952 = vmatpush.msra.mxu3 %v3826_v41  ;;  %v2049_v41 = vsub.f32 %v4031_v47, %v2048_v3  ;;  %v2060_v44 = vand.u32 4294901760, %v4058_v18  ;;  %v2066_v36 = vand.u32 4294901760, %v4072_v60 }
 0x135   :  { %1850 = vmatpush.msra.mxu1 %v3863_v30  ;;  %1911 = vmatpush.msra.mxu2 %v1738_v2  ;;  %v4096_v2 = vand.u32 4294901760, %v1981_v29 }
 0x136   :  { %1797 = vmatpush.msra.mxu0 %v3836_v49  ;;  %1954 = vmatpush.msra.mxu3 %v3838_v59  ;;  %v1980_v49 = vld [vmem:[%s4652_s2 + $0x38] sm:$0xff]  ;;  %v2055_v59 = vsub.f32 %v4044_v37, %v2054_v34  ;;  %v2061_v11 = vsub.f32 %v4058_v18, %v2060_v44  ;;  %v2067_v19 = vsub.f32 %v4072_v60, %v2066_v36 }
 0x137   :  { %1852 = vmatpush.msra.mxu1 %v3876_v15  ;;  %1915 = vmatpush.msra.mxu2 %v1744_v55  ;;  %v4114_v55 = vsub.f32 %v1982_v8, %v4082_v33  ;;  %v4125_v48 = vand.u32 4294901760, %v1980_v49 }
 0x138   :  { %1800 = vmatpush.msra.mxu0 %v3848_v24  ;;  %1956 = vmatpush.msra.mxu3 %v3850_v38  ;;  %v1979_v38 = vld [vmem:[%s4652_s2 + $0x30] sm:$0xff]  ;;  %v2050_v24 = vand.u32 4294901760, %v2049_v41  ;;  %v2062_v46 = vand.u32 4294901760, %v2061_v11  ;;  %v2068_v21 = vand.u32 4294901760, %v2067_v19  ;;  %v1973_v41 = vld [vmem:[%s4652_s2] sm:$0xff] }
 0x139   :  { %1854 = vmatpush.msra.mxu1 %v3891_v16  ;;  %1919 = vmatpush.msra.mxu2 %v1750_v35  ;;  %v4131_v35 = vsub.f32 %v1981_v29, %v4096_v2  ;;  %v4144_v45 = vand.u32 4294901760, %v1979_v38  ;;  %v4158_v42 = vsub.f32 %v1980_v49, %v4125_v48  ;;  %v644_v63 = vpop.f32.mrf.mxu0  ;;  %v745_v49 = vpop.f32.mrf.mxu1 }
 0x13a   :  { %1803 = vmatpush.msra.mxu0 %v3861_v50  ;;  %1958 = vmatpush.msra.mxu3 %v3863_v30  ;;  %v1978_v30 = vld [vmem:[%s4652_s2 + $0x28] sm:$0xff]  ;;  %v2056_v50 = vand.u32 4294901760, %v2055_v59  ;;  %v4742_v59 = vld [vmem:[#allocation8_spill] sm:$0xff]  ;;  %v799_v61 = vpop.f32.mrf.mxu2 }
 0x13b   :  { %1856 = vmatpush.msra.mxu1 %v3904_v40  ;;  %1923 = vmatpush.msra.mxu2 %v1756_v20  ;;  %v2078_v20 = vand.u32 4294901760, %v4108_v10  ;;  %v4160_v7 = vand.u32 4294901760, %v1978_v30  ;;  %v2090_v13 = vand.u32 4294901760, %v4131_v35  ;;  %v2096_v12 = vand.u32 4294901760, %v4158_v42 }
 0x13c   :  { %1806 = vmatpush.msra.mxu0 %v3874_v56  ;;  %1960 = vmatpush.msra.mxu3 %v3876_v15  ;;  %v2084_v56 = vand.u32 4294901760, %v4114_v55  ;;  %v1977_v15 = vld [vmem:[%s4652_s2 + $0x20] sm:$0xff] }
 0x13d   :  { %1860 = vmatmul.f32.vlgmr.msra.gmra.mxu1 %v4741_v14  ;;  %1927 = vmatpush.msra.mxu2 %v1762_v27  ;;  %v602_v27 = vperm.slane %v4141_v0, 0  ;;  %v2079_v25 = vsub.f32 %v4108_v10, %v2078_v20  ;;  %v4176_v28 = vand.u32 4294901760, %v1977_v15  ;;  %v4189_v17 = vsub.f32 %v1978_v30, %v4160_v7 }
 0x13e   :  { %2051 = vmatpush.msrb.mxu1 %v2050_v24  ;;  %1809 = vmatpush.msra.mxu0 %v3887_v23  ;;  %v1976_v23 = vld [vmem:[%s4652_s2 + $0x18] sm:$0xff]  ;;  %v2085_v39 = vsub.f32 %v4114_v55, %v2084_v56  ;;  %v2091_v43 = vsub.f32 %v4131_v35, %v2090_v13 }
 0x13f   :  { %1962 = vmatpush.msra.mxu3 %v3891_v16  ;;  %1929 = vmatmul.f32.vlgmr.msra.gmra.mxu2 %v3515_v26  ;;  %v4174_v16 = vsub.f32 %v1979_v38, %v4144_v45  ;;  %v645_v9 = vadd.f32 %v644_v63, %v602_v27  ;;  %v2080_v5 = vand.u32 4294901760, %v2079_v25  ;;  %v4203_v8 = vsub.f32 %v1977_v15, %v4176_v28 }
 0x140   :  { %2057 = vmatpush.msrb.mxu1 %v2056_v50  ;;  %1812 = vmatpush.msra.mxu0 %v3900_v53  ;;  %v1975_v53 = vld [vmem:[%s4652_s2 + $0x10] sm:$0xff]  ;;  %v2097_v38 = vsub.f32 %v4158_v42, %v2096_v12  ;;  %v2108_v24 = vand.u32 4294901760, %v4189_v17  ;;  %v2092_v50 = vand.u32 4294901760, %v2091_v43  ;;  %v838_v43 = vpop.f32.mrf.mxu3 }
 0x141   :  { %1964 = vmatpush.msra.mxu3 %v3904_v40  ;;  %2149 = vmatpush.msrb.mxu2 %v4031_v47  ;;  %v4191_v40 = vand.u32 4294901760, %v1976_v23  ;;  %v2102_v31 = vand.u32 4294901760, %v4174_v16  ;;  %v4205_v29 = vand.u32 4294901760, %v1975_v53  ;;  %v746_v30 = vadd.f32 %v745_v49, %v645_v9 }
 0x142   :  { %1966 = vmatmul.f32.vlgmr.msra.gmra.mxu3 %v3515_v26  ;;  %2063 = vmatpush.msrb.mxu1 %v2062_v46  ;;  %v1974_v26 = vld [vmem:[%s4652_s2 + $0x8] sm:$0xff]  ;;  %v2114_v14 = vand.u32 4294901760, %v4203_v8  ;;  %v4232_v46 = vand.u32 4294901760, %v1973_v41  ;;  %v2098_v27 = vand.u32 4294901760, %v2097_v38 }
 0x143   :  { %1815 = vmatpush.msra.mxu0 %v3915_v54  ;;  %2152 = vmatpush.msrb.mxu2 %v4044_v37  ;;  %v2086_v54 = vand.u32 4294901760, %v2085_v39  ;;  %v4219_v11 = vsub.f32 %v1976_v23, %v4191_v40  ;;  %v2103_v19 = vsub.f32 %v4174_v16, %v2102_v31  ;;  %v4230_v15 = vsub.f32 %v1975_v53, %v4205_v29 }
 0x144   :  { %2069 = vmatpush.msrb.mxu1 %v2068_v21  ;;  %2202 = vmatpush.msrb.mxu3 %v4010_v58  ;;  %v2109_v23 = vsub.f32 %v4189_v17, %v2108_v24  ;;  %v800_v25 = vadd.f32 %v799_v61, %v746_v30  ;;  %v2115_v53 = vsub.f32 %v4203_v8, %v2114_v14 }
 0x145   :  { %1818 = vmatpush.msra.mxu0 %v3926_v62  ;;  %2155 = vmatpush.msrb.mxu2 %v4058_v18  ;;  %v4221_v62 = vand.u32 4294901760, %v1974_v26  ;;  %v2120_v21 = vand.u32 4294901760, %v4219_v11  ;;  %v2104_v39 = vand.u32 4294901760, %v2103_v19  ;;  %v4252_v9 = vsub.f32 %v1973_v41, %v4232_v46  ;;  %v907_v41 = vpop.f32.mrf.mxu0 }
 0x146   :  { %1821 = vmatmul.f32.vlgmr.msra.gmra.mxu0 %v4742_v59  ;;  %2075 = vmatpush.msrb.mxu1 %v2074_v52  ;;  %v2126_v52 = vand.u32 4294901760, %v4230_v15  ;;  %v839_v49 = vadd.f32 %v838_v43, %v800_v25  ;;  %v2116_v59 = vand.u32 4294901760, %v2115_v53  ;;  %v944_v25 = vpop.f32.mrf.mxu1 }
 0x147   :  { %2006 = vmatpush.msrb.mxu0 %v4010_v58  ;;  %2204 = vmatpush.msrb.mxu3 %v4020_v57  ;;  %v4242_v63 = vsub.f32 %v1974_v26, %v4221_v62  ;;  %v2110_v26 = vand.u32 4294901760, %v2109_v23  ;;  %v2138_v30 = vand.u32 4294901760, %v4252_v9 }
 0x148   :  { %2081 = vmatpush.msrb.mxu1 %v2080_v5  ;;  %2158 = vmatpush.msrb.mxu2 %v4072_v60  ;;  %v2121_v5 = vsub.f32 %v4219_v11, %v2120_v21  ;;  %v2127_v38 = vsub.f32 %v4230_v15, %v2126_v52  ;;  %v908_v61 = vadd.f32 %v907_v41, %v839_v49 }
 0x149   :  { %2008 = vmatpush.msrb.mxu0 %v4020_v57  ;;  %2206 = vmatpush.msrb.mxu3 %v4033_v22  ;;  %v2139_v23 = vsub.f32 %v4252_v9, %v2138_v30 }
 0x14a   :  { %2087 = vmatpush.msrb.mxu1 %v2086_v54  ;;  %2161 = vmatpush.msrb.mxu2 %v4091_v32  ;;  %v2132_v54 = vand.u32 4294901760, %v4242_v63  ;;  %v945_v43 = vadd.f32 %v944_v25, %v908_v61  ;;  %v2002_v32 = vld [vmem:[%s4652_s2 + $0xe8] sm:$0xff] }
 0x14b   :  { %2010 = vmatpush.msrb.mxu0 %v4033_v22  ;;  %2208 = vmatpush.msrb.mxu3 %v4046_v4 }
 0x14c   :  { %2093 = vmatpush.msrb.mxu1 %v2092_v50  ;;  %2164 = vmatpush.msrb.mxu2 %v4108_v10  ;;  %v2122_v50 = vand.u32 4294901760, %v2121_v5  ;;  %v2133_v19 = vsub.f32 %v4242_v63, %v2132_v54  ;;  %v2001_v10 = vld [vmem:[%s4652_s2 + $0xe0] sm:$0xff] }
 0x14d   :  { %2012 = vmatpush.msrb.mxu0 %v4046_v4  ;;  %2210 = vmatpush.msrb.mxu3 %v4060_v1 }
 0x14e   :  { %2099 = vmatpush.msrb.mxu1 %v2098_v27  ;;  %2167 = vmatpush.msrb.mxu2 %v4114_v55  ;;  %v2128_v27 = vand.u32 4294901760, %v2127_v38 }
 0x14f   :  { %2014 = vmatpush.msrb.mxu0 %v4060_v1  ;;  %2212 = vmatpush.msrb.mxu3 %v4074_v51 }
 0x150   :  { %2105 = vmatpush.msrb.mxu1 %v2104_v39  ;;  %2170 = vmatpush.msrb.mxu2 %v4131_v35  ;;  %v2134_v39 = vand.u32 4294901760, %v2133_v19  ;;  %v2000_v35 = vld [vmem:[%s4652_s2 + $0xd8] sm:$0xff] }
 0x151   :  { %2016 = vmatpush.msrb.mxu0 %v4074_v51  ;;  %2214 = vmatpush.msrb.mxu3 %v4082_v33 }
 0x152   :  { %2111 = vmatpush.msrb.mxu1 %v2110_v26  ;;  %2173 = vmatpush.msrb.mxu2 %v4158_v42  ;;  %v2140_v26 = vand.u32 4294901760, %v2139_v23  ;;  %v2004_v23 = vld [vmem:[%s4652_s2 + $0xf8] sm:$0xff]  ;;  %v4390_v42 = vand.u32 4294901760, %v2000_v35 }
 0x153   :  { %2018 = vmatpush.msrb.mxu0 %v4082_v33  ;;  %2216 = vmatpush.msrb.mxu3 %v4096_v2 }
 0x154   :  { %2117 = vmatpush.msrb.mxu1 %v2116_v59  ;;  %2176 = vmatpush.msrb.mxu2 %v4174_v16 }
 0x155   :  { %2020 = vmatpush.msrb.mxu0 %v4096_v2  ;;  %2218 = vmatpush.msrb.mxu3 %v4125_v48  ;;  %v985_v53 = vpop.f32.mrf.mxu2  ;;  %v1086_v49 = vpop.f32.mrf.mxu3 }
 0x156   :  { %2123 = vmatpush.msrb.mxu1 %v2122_v50  ;;  %2179 = vmatpush.msrb.mxu2 %v4189_v17  ;;  %v986_v5 = vadd.f32 %v985_v53, %v945_v43  ;;  %v1179_v50 = vpop.f32.mrf.mxu1  ;;  %v1996_v43 = vld [vmem:[%s4652_s2 + $0xb8] sm:$0xff] }
 0x157   :  { %2022 = vmatpush.msrb.mxu0 %v4125_v48  ;;  %2220 = vmatpush.msrb.mxu3 %v4144_v45 }
 0x158   :  { %2129 = vmatpush.msrb.mxu1 %v2128_v27  ;;  %2182 = vmatpush.msrb.mxu2 %v4203_v8  ;;  %v1087_v41 = vadd.f32 %v1086_v49, %v986_v5 }
 0x159   :  { %2024 = vmatpush.msrb.mxu0 %v4144_v45  ;;  %2222 = vmatpush.msrb.mxu3 %v4160_v7 }
 0x15a   :  { %2135 = vmatpush.msrb.mxu1 %v2134_v39  ;;  %2185 = vmatpush.msrb.mxu2 %v4219_v11 }
 0x15b   :  { %2026 = vmatpush.msrb.mxu0 %v4160_v7  ;;  %2224 = vmatpush.msrb.mxu3 %v4176_v28 }
 0x15c   :  { %2141 = vmatpush.msrb.mxu1 %v2140_v26  ;;  %2188 = vmatpush.msrb.mxu2 %v4230_v15 }
 0x15d   :  { %2028 = vmatpush.msrb.mxu0 %v4176_v28  ;;  %2226 = vmatpush.msrb.mxu3 %v4191_v40 }
 0x15e   :  { %2310 = vmatpush.msra.mxu1 %v4010_v58  ;;  %v1140_v59 = vpop.f32.mrf.mxu0  ;;  %2191 = vmatpush.msrb.mxu2 %v4242_v63  ;;  %v1248_v19 = vpop.f32.mrf.mxu2 }
 0x15f   :  { %2030 = vmatpush.msrb.mxu0 %v4191_v40  ;;  %v1141_v38 = vadd.f32 %v1140_v59, %v1087_v41  ;;  %2228 = vmatpush.msrb.mxu3 %v4205_v29  ;;  %v1995_v41 = vld [vmem:[%s4652_s2 + $0xb0] sm:$0xff] }
 0x160   :  { %2312 = vmatpush.msra.mxu1 %v4020_v57  ;;  %2194 = vmatpush.msrb.mxu2 %v4252_v9  ;;  %v1285_v57 = vpop.f32.mrf.mxu3 }
 0x161   :  { %2032 = vmatpush.msrb.mxu0 %v4205_v29  ;;  %v1180_v58 = vadd.f32 %v1179_v50, %v1141_v38  ;;  %2230 = vmatpush.msrb.mxu3 %v4221_v62 }
 0x162   :  { %2314 = vmatpush.msra.mxu1 %v4033_v22 }
 0x163   :  { %2034 = vmatpush.msrb.mxu0 %v4221_v62  ;;  %v1249_v61 = vadd.f32 %v1248_v19, %v1180_v58  ;;  %2232 = vmatpush.msrb.mxu3 %v4232_v46  ;;  %v1994_v58 = vld [vmem:[%s4652_s2 + $0xa8] sm:$0xff] }
 0x164   :  { %2316 = vmatpush.msra.mxu1 %v4046_v4  ;;  %v4317_v4 = vand.u32 4294901760, %v2004_v23 }
 0x165   :  { %2036 = vmatpush.msrb.mxu0 %v4232_v46  ;;  %v1286_v27 = vadd.f32 %v1285_v57, %v1249_v61  ;;  %v4488_v57 = vand.u32 4294901760, %v1994_v58 }
 0x166   :  { %2318 = vmatpush.msra.mxu1 %v4060_v1  ;;  %v4325_v47 = vsub.f32 %v2004_v23, %v4317_v4  ;;  %2347 = vmatpush.msra.mxu2 %v4317_v4 }
 0x167   :  { %2243 = vmatpush.msra.mxu0 %v2048_v3  ;;  %v1970_v22 = vmax.f32 %v1286_v27, 0.0  ;;  %v1993_v27 = vld [vmem:[%s4652_s2 + $0xa0] sm:$0xff] }
 0x168   :  { %2320 = vmatpush.msra.mxu1 %v4074_v51  ;;  %v2389_v37 = vand.u32 4294901760, %v4325_v47 }
 0x169   :  { %2247 = vmatpush.msra.mxu0 %v2054_v34  ;;  %v4319_v25 = vand.u32 4294901760, %v1970_v22 }
 0x16a   :  { %2322 = vmatpush.msra.mxu1 %v4082_v33  ;;  %v2390_v18 = vsub.f32 %v4325_v47, %v2389_v37  ;;  %v2003_v33 = vld [vmem:[%s4652_s2 + $0xf0] sm:$0xff] }
 0x16b   :  { %2251 = vmatpush.msra.mxu0 %v2060_v44  ;;  %v2038_v3 = vsub.f32 %v1970_v22, %v4319_v25  ;;  %2143 = vmatmul.f32.vlgmr.msrb.gmra.mxu1 %v4319_v25  ;;  %v4350_v44 = vand.u32 4294901760, %v2003_v33 }
 0x16c   :  { %2324 = vmatpush.msra.mxu1 %v4096_v2  ;;  %v2391_v60 = vand.u32 4294901760, %v2390_v18  ;;  %v1992_v18 = vld [vmem:[%s4652_s2 + $0x98] sm:$0xff] }
 0x16d   :  { %2255 = vmatpush.msra.mxu0 %v2066_v36  ;;  %v2039_v1 = vand.u32 4294901760, %v2038_v3  ;;  %2197 = vmatmul.f32.vlgmr.msrb.gmra.mxu2 %v2038_v3  ;;  %v4359_v2 = vsub.f32 %v2003_v33, %v4350_v44  ;;  %v4361_v36 = vand.u32 4294901760, %v2002_v32  ;;  %v1991_v33 = vld [vmem:[%s4652_s2 + $0x90] sm:$0xff] }
 0x16e   :  { %2326 = vmatpush.msra.mxu1 %v4125_v48  ;;  %2392 = vmatpush.msra.mxu3 %v2391_v60  ;;  %v4374_v48 = vand.u32 4294901760, %v2001_v10 }
 0x16f   :  { %2259 = vmatpush.msra.mxu0 %v2072_v6  ;;  %v2040_v34 = vsub.f32 %v2038_v3, %v2039_v1  ;;  %2236 = vmatmul.f32.vlgmr.msrb.gmra.mxu3 %v2039_v1  ;;  %v2395_v55 = vand.u32 4294901760, %v4359_v2  ;;  %v4372_v6 = vsub.f32 %v2002_v32, %v4361_v36  ;;  %v4503_v1 = vsub.f32 %v1994_v58, %v4488_v57  ;;  %v1990_v32 = vld [vmem:[%s4652_s2 + $0x88] sm:$0xff] }
 0x170   :  { %2328 = vmatpush.msra.mxu1 %v4144_v45  ;;  %2349 = vmatpush.msra.mxu2 %v4350_v44 }
 0x171   :  { %2263 = vmatpush.msra.mxu0 %v2078_v20  ;;  %v2041_v51 = vand.u32 4294901760, %v2040_v34  ;;  %v2396_v20 = vsub.f32 %v4359_v2, %v2395_v55  ;;  %v2401_v45 = vand.u32 4294901760, %v4372_v6 }
 0x172   :  { %2330 = vmatpush.msra.mxu1 %v4160_v7  ;;  %2351 = vmatpush.msra.mxu2 %v4361_v36  ;;  %v1999_v7 = vld [vmem:[%s4652_s2 + $0xd0] sm:$0xff] }
 0x173   :  { %2267 = vmatpush.msra.mxu0 %v2084_v56  ;;  %v4388_v56 = vsub.f32 %v2001_v10, %v4374_v48  ;;  %v2402_v16 = vsub.f32 %v4372_v6, %v2401_v45  ;;  %v4410_v17 = vand.u32 4294901760, %v1999_v7  ;;  %v1989_v10 = vld [vmem:[%s4652_s2 + $0x80] sm:$0xff] }
 0x174   :  { %2332 = vmatpush.msra.mxu1 %v4176_v28  ;;  %2042 = vmatmul.f32.vlgmr.msrb.gmra.mxu0 %v2041_v51  ;;  %v4515_v51 = vand.u32 4294901760, %v1992_v18 }
 0x175   :  { %2271 = vmatpush.msra.mxu0 %v2090_v13  ;;  %2353 = vmatpush.msra.mxu2 %v4374_v48  ;;  %v2397_v13 = vand.u32 4294901760, %v2396_v20  ;;  %v2407_v28 = vand.u32 4294901760, %v4388_v56  ;;  %v4425_v8 = vsub.f32 %v1999_v7, %v4410_v17  ;;  %v2449_v20 = vand.u32 4294901760, %v4503_v1 }
 0x176   :  { %2334 = vmatpush.msra.mxu1 %v4191_v40  ;;  %v1998_v40 = vld [vmem:[%s4652_s2 + $0xc8] sm:$0xff]  ;;  %v4529_v7 = vand.u32 4294901760, %v1991_v33 }
 0x177   :  { %2275 = vmatpush.msra.mxu0 %v2096_v12  ;;  %v4404_v12 = vsub.f32 %v2000_v35, %v4390_v42  ;;  %2355 = vmatpush.msra.mxu2 %v4390_v42 }
 0x178   :  { %2336 = vmatpush.msra.mxu1 %v4205_v29  ;;  %2398 = vmatpush.msra.mxu3 %v2397_v13  ;;  %v2408_v29 = vsub.f32 %v4388_v56, %v2407_v28  ;;  %v4531_v13 = vand.u32 4294901760, %v1990_v32 }
 0x179   :  { %2279 = vmatpush.msra.mxu0 %v2102_v31  ;;  %v2403_v31 = vand.u32 4294901760, %v2402_v16  ;;  %2357 = vmatpush.msra.mxu2 %v4410_v17 }
 0x17a   :  { %2338 = vmatpush.msra.mxu1 %v4221_v62  ;;  %v4419_v62 = vand.u32 4294901760, %v1998_v40 }
 0x17b   :  { %2283 = vmatpush.msra.mxu0 %v2108_v24  ;;  %v2413_v24 = vand.u32 4294901760, %v4404_v12  ;;  %2404 = vmatpush.msra.mxu3 %v2403_v31  ;;  %v4536_v31 = vsub.f32 %v1992_v18, %v4515_v51 }
 0x17c   :  { %2340 = vmatpush.msra.mxu1 %v4232_v46  ;;  %v2409_v46 = vand.u32 4294901760, %v2408_v29  ;;  %v4435_v53 = vsub.f32 %v1998_v40, %v4419_v62  ;;  %2359 = vmatpush.msra.mxu2 %v4419_v62  ;;  %v4539_v29 = vand.u32 4294901760, %v1989_v10 }
 0x17d   :  { %2287 = vmatpush.msra.mxu0 %v2114_v14  ;;  %2342 = vmatmul.f32.vlgmr.msra.gmra.mxu1 %v4319_v25  ;;  %v1997_v14 = vld [vmem:[%s4652_s2 + $0xc0] sm:$0xff]  ;;  %v2414_v39 = vsub.f32 %v4404_v12, %v2413_v24  ;;  %s2765_s2 = smov [#allocation5]  }
 0x17e   :  { %2543 = vmatpush.msrb.mxu1 %v4317_v4  ;;  %v4437_v11 = vand.u32 4294901760, %v1997_v14  ;;  %2410 = vmatpush.msra.mxu3 %v2409_v46  ;;  %v2425_v5 = vand.u32 4294901760, %v4435_v53  ;;  %v4546_v46 = vsub.f32 %v1991_v33, %v4529_v7  ;;  %s2694_s25 = sshll.u32 %s2765_s2, 4  ;;  %s2695_s25 = int_to_ptr.vmem [resolvable:$true] %s2694_s25 }
 0x17f   :  { %2291 = vmatpush.msra.mxu0 %v2120_v21  ;;  %v2419_v21 = vand.u32 4294901760, %v4425_v8  ;;  %v2415_v26 = vand.u32 4294901760, %v2414_v39  ;;  %v4549_v39 = vsub.f32 %v1990_v32, %v4531_v13 }
 0x180   :  { %2545 = vmatpush.msrb.mxu1 %v4350_v44  ;;  %v4449_v49 = vsub.f32 %v1997_v14, %v4437_v11  ;;  %2361 = vmatpush.msra.mxu2 %v4437_v11  ;;  %v2426_v59 = vsub.f32 %v4435_v53, %v2425_v5  ;;  %v2450_v14 = vsub.f32 %v4503_v1, %v2449_v20 }
 0x181   :  { %2295 = vmatpush.msra.mxu0 %v2126_v52  ;;  %v2420_v15 = vsub.f32 %v4425_v8, %v2419_v21  ;;  %v4457_v52 = vand.u32 4294901760, %v1996_v43  ;;  %2416 = vmatpush.msra.mxu3 %v2415_v26  ;;  %v2461_v26 = vand.u32 4294901760, %v4536_v31 }
 0x182   :  { %2547 = vmatpush.msrb.mxu1 %v4361_v36  ;;  %v2431_v63 = vand.u32 4294901760, %v4449_v49  ;;  %v2427_v19 = vand.u32 4294901760, %v2426_v59  ;;  %v2467_v59 = vand.u32 4294901760, %v4546_v46 }
 0x183   :  { %2299 = vmatpush.msra.mxu0 %v2132_v54  ;;  %v4467_v54 = vand.u32 4294901760, %v1995_v41  ;;  %v2421_v38 = vand.u32 4294901760, %v2420_v15  ;;  %v4473_v50 = vsub.f32 %v1996_v43, %v4457_v52  ;;  %2363 = vmatpush.msra.mxu2 %v4457_v52  ;;  %v4557_v15 = vsub.f32 %v1989_v10, %v4539_v29 }
 0x184   :  { %2549 = vmatpush.msrb.mxu1 %v4374_v48  ;;  %v2432_v61 = vsub.f32 %v4449_v49, %v2431_v63 }
 0x185   :  { %2303 = vmatpush.msra.mxu0 %v2138_v30  ;;  %v4484_v9 = vsub.f32 %v1995_v41, %v4467_v54  ;;  %2422 = vmatpush.msra.mxu3 %v2421_v38  ;;  %v2437_v30 = vand.u32 4294901760, %v4473_v50  ;;  %v2451_v41 = vand.u32 4294901760, %v2450_v14  ;;  %v2473_v38 = vand.u32 4294901760, %v4549_v39 }
 0x186   :  { %2305 = vmatmul.f32.vlgmr.msra.gmra.mxu0 %v4319_v25  ;;  %2551 = vmatpush.msrb.mxu1 %v4390_v42  ;;  %v2433_v22 = vand.u32 4294901760, %v2432_v61  ;;  %v4495_v25 = vand.u32 4294901760, %v1993_v27  ;;  %v2479_v61 = vand.u32 4294901760, %v4557_v15 }
 0x187   :  { %2490 = vmatpush.msrb.mxu0 %v4325_v47  ;;  %v2443_v23 = vand.u32 4294901760, %v4484_v9  ;;  %2365 = vmatpush.msra.mxu2 %v4467_v54  ;;  %v2438_v3 = vsub.f32 %v4473_v50, %v2437_v30  ;;  %v1326_v47 = vpop.f32.mrf.mxu0 }
 0x188   :  { %2553 = vmatpush.msrb.mxu1 %v4410_v17  ;;  %2428 = vmatpush.msra.mxu3 %v2427_v19  ;;  %v4513_v60 = vsub.f32 %v1993_v27, %v4495_v25  ;;  %v2462_v19 = vsub.f32 %v4536_v31, %v2461_v26  ;;  %v2468_v27 = vsub.f32 %v4546_v46, %v2467_v59 }
 0x189   :  { %2493 = vmatpush.msrb.mxu0 %v4359_v2  ;;  %v2444_v34 = vsub.f32 %v4484_v9, %v2443_v23  ;;  %2367 = vmatpush.msra.mxu2 %v4488_v57  ;;  %v2439_v35 = vand.u32 4294901760, %v2438_v3  ;;  %v1481_v2 = vpop.f32.mrf.mxu2 }
 0x18a   :  { %2555 = vmatpush.msrb.mxu1 %v4419_v62  ;;  %2434 = vmatpush.msra.mxu3 %v2433_v22  ;;  %v2455_v40 = vand.u32 4294901760, %v4513_v60  ;;  %v2474_v22 = vsub.f32 %v4549_v39, %v2473_v38  ;;  %v2463_v3 = vand.u32 4294901760, %v2462_v19  ;;  %v2469_v18 = vand.u32 4294901760, %v2468_v27 }
 0x18b   :  { %2496 = vmatpush.msrb.mxu0 %v4372_v6  ;;  %v2445_v16 = vand.u32 4294901760, %v2444_v34  ;;  %2369 = vmatpush.msra.mxu2 %v4495_v25  ;;  %v2480_v34 = vsub.f32 %v4557_v15, %v2479_v61 }
 0x18c   :  { %2557 = vmatpush.msrb.mxu1 %v4437_v11  ;;  %2440 = vmatpush.msra.mxu3 %v2439_v35  ;;  %v2456_v43 = vsub.f32 %v4513_v60, %v2455_v40  ;;  %v2475_v33 = vand.u32 4294901760, %v2474_v22 }
 0x18d   :  { %2499 = vmatpush.msrb.mxu0 %v4388_v56  ;;  %2371 = vmatpush.msra.mxu2 %v4515_v51  ;;  %v2481_v32 = vand.u32 4294901760, %v2480_v34 }
 0x18e   :  { %2559 = vmatpush.msrb.mxu1 %v4457_v52  ;;  %2446 = vmatpush.msra.mxu3 %v2445_v16  ;;  %v2457_v58 = vand.u32 4294901760, %v2456_v43 }
 0x18f   :  { %2502 = vmatpush.msrb.mxu0 %v4404_v12  ;;  %2373 = vmatpush.msra.mxu2 %v4529_v7 }
 0x190   :  { %2561 = vmatpush.msrb.mxu1 %v4467_v54  ;;  %2452 = vmatpush.msra.mxu3 %v2451_v41 }
 0x191   :  { %2505 = vmatpush.msrb.mxu0 %v4425_v8  ;;  %2375 = vmatpush.msra.mxu2 %v4531_v13 }
 0x192   :  { %2563 = vmatpush.msrb.mxu1 %v4488_v57  ;;  %2458 = vmatpush.msra.mxu3 %v2457_v58 }
 0x193   :  { %2508 = vmatpush.msrb.mxu0 %v4435_v53  ;;  %2377 = vmatpush.msra.mxu2 %v4539_v29 }
 0x194   :  { %2565 = vmatpush.msrb.mxu1 %v4495_v25  ;;  %2464 = vmatpush.msra.mxu3 %v2463_v3 }
 0x195   :  { %2511 = vmatpush.msrb.mxu0 %v4449_v49  ;;  %2584 = vmatpush.msrb.mxu2 %v2389_v37 }
 0x196   :  { %2567 = vmatpush.msrb.mxu1 %v4515_v51  ;;  %2470 = vmatpush.msra.mxu3 %v2469_v18 }
 0x197   :  { %2514 = vmatpush.msrb.mxu0 %v4473_v50  ;;  %2588 = vmatpush.msrb.mxu2 %v2395_v55  ;;  %v1520_v55 = vpop.f32.mrf.mxu3 }
 0x198   :  { %2569 = vmatpush.msrb.mxu1 %v4529_v7  ;;  %2476 = vmatpush.msra.mxu3 %v2475_v33 }
 0x199   :  { %2517 = vmatpush.msrb.mxu0 %v4484_v9  ;;  %2592 = vmatpush.msrb.mxu2 %v2401_v45 }
 0x19a   :  { %2571 = vmatpush.msrb.mxu1 %v4531_v13  ;;  %2482 = vmatpush.msra.mxu3 %v2481_v32 }
 0x19b   :  { %2520 = vmatpush.msrb.mxu0 %v4503_v1  ;;  %2596 = vmatpush.msrb.mxu2 %v2407_v28 }
 0x19c   :  { %2651 = vmatpush.msrb.mxu3 %v4317_v4  ;;  %2573 = vmatpush.msrb.mxu1 %v4539_v29  ;;  %v603_v4 = vperm.slane %v4141_v0, 1  ;;  %v1427_v0 = vpop.f32.mrf.mxu1 }
 0x19d   :  { %2523 = vmatpush.msrb.mxu0 %v4513_v60  ;;  %2600 = vmatpush.msrb.mxu2 %v2413_v24 }
 0x19e   :  { %2653 = vmatpush.msrb.mxu3 %v4350_v44  ;;  %v1327_v37 = vadd.f32 %v1326_v47, %v603_v4 }
 0x19f   :  { %2526 = vmatpush.msrb.mxu0 %v4536_v31  ;;  %2604 = vmatpush.msrb.mxu2 %v2419_v21 }
 0x1a0   :  { %2655 = vmatpush.msrb.mxu3 %v4361_v36  ;;  %v1428_v44 = vadd.f32 %v1427_v0, %v1327_v37  ;;  %v1667_v28 = vpop.f32.mrf.mxu2 }
 0x1a1   :  { %2529 = vmatpush.msrb.mxu0 %v4546_v46  ;;  %2608 = vmatpush.msrb.mxu2 %v2425_v5 }
 0x1a2   :  { %2657 = vmatpush.msrb.mxu3 %v4374_v48  ;;  %v1482_v36 = vadd.f32 %v1481_v2, %v1428_v44  ;;  %v1589_v6 = vpop.f32.mrf.mxu0 }
 0x1a3   :  { %2532 = vmatpush.msrb.mxu0 %v4549_v39  ;;  %2612 = vmatpush.msrb.mxu2 %v2431_v63 }
 0x1a4   :  { %2659 = vmatpush.msrb.mxu3 %v4390_v42  ;;  %v1521_v48 = vadd.f32 %v1520_v55, %v1482_v36  ;;  %v1626_v56 = vpop.f32.mrf.mxu1 }
 0x1a5   :  { %2535 = vmatpush.msrb.mxu0 %v4557_v15  ;;  %2616 = vmatpush.msrb.mxu2 %v2437_v30 }
 0x1a6   :  { %2661 = vmatpush.msrb.mxu3 %v4410_v17  ;;  %v1590_v45 = vadd.f32 %v1589_v6, %v1521_v48  ;;  %v1768_v17 = vpop.f32.mrf.mxu3 }
 0x1a7   :  { %2620 = vmatpush.msrb.mxu2 %v2443_v23  ;;  %v1972_v23 = vld [vmem:[#allocation2 + $0x282] ss:$0 sm:$0xff] }
 0x1a8   :  { %2663 = vmatpush.msrb.mxu3 %v4419_v62  ;;  %v1627_v42 = vadd.f32 %v1626_v56, %v1590_v45 }
 0x1a9   :  { %2624 = vmatpush.msrb.mxu2 %v2449_v20 }
 0x1aa   :  { %2665 = vmatpush.msrb.mxu3 %v4437_v11  ;;  %v1668_v12 = vadd.f32 %v1667_v28, %v1627_v42 }
 0x1ab   :  { %2628 = vmatpush.msrb.mxu2 %v2455_v40 }
 0x1ac   :  { %2667 = vmatpush.msrb.mxu3 %v4457_v52  ;;  %v1769_v24 = vadd.f32 %v1768_v17, %v1668_v12 }
 0x1ad   :  { %2632 = vmatpush.msrb.mxu2 %v2461_v26 }
 0x1ae   :  { %2669 = vmatpush.msrb.mxu3 %v4467_v54 }
 0x1af   :  { %2636 = vmatpush.msrb.mxu2 %v2467_v59 }
 0x1b0   :  { %2671 = vmatpush.msrb.mxu3 %v4488_v57 }
 0x1b1   :  { %2640 = vmatpush.msrb.mxu2 %v2473_v38 }
 0x1b2   :  { %2673 = vmatpush.msrb.mxu3 %v4495_v25 }
 0x1b3   :  { %2644 = vmatpush.msrb.mxu2 %v2479_v61 }
 0x1b4   :  { %2675 = vmatpush.msrb.mxu3 %v4515_v51 }
 0x1b6   :  { %2677 = vmatpush.msrb.mxu3 %v4529_v7 }
 0x1b8   :  { %2679 = vmatpush.msrb.mxu3 %v4531_v13 }
 0x1ba   :  { %2681 = vmatpush.msrb.mxu3 %v4539_v29  ;;  %v1861_v53 = vpop.f32.mrf.mxu1 }
 0x1c2   :  { %v1930_v21 = vpop.f32.mrf.mxu2 }
 0x1c3   :  { %v1822_v62 = vpop.f32.mrf.mxu0 }
 0x1c4   :  { %v1823_v8 = vadd.f32 %v1822_v62, %v1769_v24 }
 0x1c5   :  { %v1967_v49 = vpop.f32.mrf.mxu3 }
 0x1c6   :  { %v1862_v11 = vadd.f32 %v1861_v53, %v1823_v8 }
 0x1c8   :  { %v1931_v5 = vadd.f32 %v1930_v21, %v1862_v11 }
 0x1ca   :  { %v1968_v52 = vadd.f32 %v1967_v49, %v1931_v5 }
 0x1cc   :  { %v1971_v63 = vmax.f32 %v1968_v52, 0.0 }
 0x1ce   :  { %v2378_v54 = vand.u32 4294901760, %v1971_v63 }
 0x1d0   :  { %v2379_v50 = vsub.f32 %v1971_v63, %v2378_v54  ;;  %2484 = vmatmul.f32.vlgmr.msra.gmra.mxu3 %v2378_v54 }
 0x1d2   :  { %v2380_v9 = vand.u32 4294901760, %v2379_v50  ;;  %2538 = vmatmul.f32.vlgmr.msrb.gmra.mxu0 %v2379_v50 }
 0x1d4   :  { %v2381_v30 = vsub.f32 %v2379_v50, %v2380_v9  ;;  %2577 = vmatmul.f32.vlgmr.msrb.gmra.mxu1 %v2380_v9 }
 0x1d6   :  { %v2382_v57 = vand.u32 4294901760, %v2381_v30 }
 0x1d8   :  { %2383 = vmatmul.f32.vlgmr.msra.gmra.mxu2 %v2382_v57  ;;  %2683 = vmatmul.f32.vlgmr.msrb.gmra.mxu3 %v2378_v54 }
 0x1e0   :  { %2646 = vmatmul.f32.vlgmr.msrb.gmra.mxu2 %v2378_v54 }
 0x1e8   :  { %v2144_v60 = vpop.f32.mrf.mxu1 }
 0x1f0   :  { %v2198_v10 = vpop.f32.mrf.mxu2 }
 0x1f1   :  { %v2043_v25 = vpop.f32.mrf.mxu0 }
 0x1f2   :  { %v2044_v1 = vadd.f32 %v2043_v25, %v1972_v23  ;;  %v2237_v20 = vpop.f32.mrf.mxu3 }
 0x1f4   :  { %v2145_v51 = vadd.f32 %v2144_v60, %v2044_v1 }
 0x1f6   :  { %v2199_v35 = vadd.f32 %v2198_v10, %v2145_v51 }
 0x1f8   :  { %v2238_v7 = vadd.f32 %v2237_v20, %v2199_v35 }
 0x1fa   :  { %v2343_v40 = vpop.f32.mrf.mxu1 }
 0x203   :  { %v2306_v13 = vpop.f32.mrf.mxu0 }
 0x204   :  { %v2307_v16 = vadd.f32 %v2306_v13, %v2238_v7 }
 0x206   :  { %v2344_v31 = vadd.f32 %v2343_v40, %v2307_v16 }
 0x24f   :  { %v2539_v43 = vpop.f32.mrf.mxu0 }
 0x251   :  { %v2578_v15 = vpop.f32.mrf.mxu1 }
 0x253   :  { %v2485_v29 = vpop.f32.mrf.mxu3 }
 0x25b   :  { %v2384_v14 = vpop.f32.mrf.mxu2  ;;  %v2684_v58 = vpop.f32.mrf.mxu3 }
 0x25c   :  { %v2385_v46 = vadd.f32 %v2384_v14, %v2344_v31 }
 0x25e   :  { %v2486_v39 = vadd.f32 %v2485_v29, %v2385_v46 }
 0x260   :  { %v2540_v26 = vadd.f32 %v2539_v43, %v2486_v39 }
 0x262   :  { %v2579_v41 = vadd.f32 %v2578_v15, %v2540_v26 }
 0x263   :  { %v2647_v59 = vpop.f32.mrf.mxu2 }
 0x264   :  { %v2648_v38 = vadd.f32 %v2647_v59, %v2579_v41 }
 0x266   :  { %v2685_v19 = vadd.f32 %v2684_v58, %v2648_v38 }
 0x268   :  { %2688 = vst.msk [vmem:[#allocation5] sm:$0xff] %vm2687_vm1, %v2685_v19 }
 0x269   :  { %2699 = dma.vmem_to_hbm [thread:$0]  %s2695_s25, 128, %s2697_s28, [#allocation4]  }
 0x26a   :  { %2760 = dma.done.wait [#allocation4], 128  }
 0x26b   :  { %2761 = vsyncadd [#allocation4], 4294967168 }
 0x26c   :  { %2704 = vsyncpa [#allocation3], 1 }
 0x26d   :  { %2705 = vsyncpa [#allocation4], 1 }

</bundles_post_ra>
